<compile_context>
chip_gen: v7x
topology: tpu7x:2x2x1
jax: 0.10.0
libtpu: 0.0.40
codegen_flags: <defaults>
</compile_context>

<pallas_src>
import functools

import jax
import jax.numpy as jnp
from jax.experimental import pallas as pl
from jax.experimental.pallas import tpu as pltpu


N_HEAD = 8
BERT_DIM = 32
HIDDEN_DIM = 32
POLARITIES = 3
VOCAB = 50


# --------------------------- in-kernel building blocks ---------------------- #

def _attention_block(k, q, wk_ref, bk_ref, wks_ref, bks_ref,
                     wqs_ref, bqs_ref, wp_ref, bp_ref):
    """Multi-head 'mlp'-score attention for one batch element, all heads at once.

    k: (Lk, E), q: (Lq, E) f32 values.
    wk/bk      : full K projection, (E, H*D) / (1, H*D)
    wks/bks    : K score projection with w_mlp[:D] folded in, replicated D
                 times per head along the channel axis, (E, H*D) / (1, H*D)
    wqs/bqs    : same for Q with w_mlp[D:]
    wp/bp      : output projection (H*D, out) / (1, out)
    returns (Lq, out) f32.
    """
    kx = jnp.dot(k, wk_ref[...], preferred_element_type=jnp.float32) + bk_ref[...]
    sk = jnp.dot(k, wks_ref[...], preferred_element_type=jnp.float32) + bks_ref[...]
    sq = jnp.dot(q, wqs_ref[...], preferred_element_type=jnp.float32) + bqs_ref[...]

    # score[qi, ki, c] is the per-head mlp score, replicated across the D
    # channels of each head, so a per-channel softmax over ki equals the
    # reference per-head softmax.
    score = jnp.tanh(sq[:, None, :] + sk[None, :, :])              # (Lq, Lk, HD)
    # tanh is bounded in [-1, 1] -> exp cannot overflow; skip max-subtraction.
    e = jnp.exp(score)
    p = e * pl.reciprocal(jnp.sum(e, axis=1, keepdims=True), approx=True)
    o = jnp.sum(p * kx[None, :, :], axis=1)                        # (Lq, HD)
    return jnp.dot(o, wp_ref[...], preferred_element_type=jnp.float32) + bp_ref[...]


def _ffn_block(x, w1_ref, b1_ref, w2_ref, b2_ref):
    """PositionwiseFeedForward (Conv1d k=1 == per-position matmul)."""
    h = jnp.dot(x, w1_ref[...], preferred_element_type=jnp.float32) + b1_ref[...]
    h = jnp.maximum(h, 0.0)
    return jnp.dot(h, w2_ref[...], preferred_element_type=jnp.float32) + b2_ref[...]


def _aen_fused_kernel(*refs):
    """Entire AEN_BERT head for ONE batch element (grid axis 0 = batch)."""
    ctx_ref, tgt_ref, clen_ref, tlen_ref = refs[0:4]
    attn_k_w = refs[4:12]
    attn_q_w = refs[12:20]
    attn_s1_w = refs[20:28]
    ffn_c_w = refs[28:32]
    ffn_t_w = refs[32:36]
    wd_ref, bd_ref = refs[36:38]
    out_ref = refs[38]

    ctx = ctx_ref[...].astype(jnp.float32)                         # (Lc, E)
    tgt = tgt_ref[...].astype(jnp.float32)                         # (Lt, E)

    hc = _ffn_block(_attention_block(ctx, ctx, *attn_k_w), *ffn_c_w)   # (Lc, H)
    ht = _ffn_block(_attention_block(ctx, tgt, *attn_q_w), *ffn_t_w)   # (Lt, H)
    s1 = _attention_block(hc, ht, *attn_s1_w)                          # (Lt, H)

    inv_c = pl.reciprocal(clen_ref[...], approx=True)              # (1, 1)
    inv_t = pl.reciprocal(tlen_ref[...], approx=True)
    hc_mean = jnp.sum(hc, axis=0, keepdims=True) * inv_c           # (1, H)
    ht_mean = jnp.sum(ht, axis=0, keepdims=True) * inv_t
    s1_mean = jnp.sum(s1, axis=0, keepdims=True) * inv_c           # reference divides s1 by context_len

    x = jnp.concatenate([hc_mean, s1_mean, ht_mean], axis=-1)      # (1, 3H)
    y = jnp.dot(x, wd_ref[...], preferred_element_type=jnp.float32) + bd_ref[...]
    out_ref[...] = y.astype(out_ref.dtype)


# -------------------------------- wrapper ----------------------------------- #

def _resident_spec(arr):
    """Whole-array, VMEM-resident block (constant block index -> fetched once)."""
    zeros = (0,) * arr.ndim
    return pl.BlockSpec(arr.shape, lambda b, _z=zeros: _z)


def aen_fused_call(ctx_emb, tgt_emb, clen, tlen, weights, *, out_dim):
    B, Lc, E = ctx_emb.shape
    _, Lt, _ = tgt_emb.shape
    in_specs = [
        pl.BlockSpec((None, Lc, E), lambda b: (b, 0, 0)),   # per-batch context
        pl.BlockSpec((None, Lt, E), lambda b: (b, 0, 0)),   # per-batch target
        pl.BlockSpec((None, 1, 1), lambda b: (b, 0, 0)),    # context length
        pl.BlockSpec((None, 1, 1), lambda b: (b, 0, 0)),    # target length
    ] + [_resident_spec(w) for w in weights]

    out = pl.pallas_call(
        _aen_fused_kernel,
        grid=(B,),
        out_shape=jax.ShapeDtypeStruct((B, 1, out_dim), jnp.float32),
        in_specs=in_specs,
        out_specs=pl.BlockSpec((None, 1, out_dim), lambda b: (b, 0, 0)),
        compiler_params=pltpu.CompilerParams(
            dimension_semantics=("parallel",),   # batch rows split across v7x's 2 TCs
            vmem_limit_bytes=32 * 1024 * 1024,
        ),
    )(ctx_emb, tgt_emb, clen, tlen, *weights)
    return out.reshape(B, out_dim)


# ------------------------------ parameters ---------------------------------- #

def init_params(key):
    hd_bert = BERT_DIM // N_HEAD
    hd_hid = HIDDEN_DIM // N_HEAD
    keys = iter(jax.random.split(key, 32))

    def nrm(shape, scale=0.1):
        return scale * jax.random.normal(next(keys), shape, jnp.float32)

    def attn_p(embed_dim, hd, out_dim):
        return dict(
            wk=nrm((embed_dim, N_HEAD * hd)), bk=nrm((1, N_HEAD * hd)),
            wq=nrm((embed_dim, N_HEAD * hd)), bq=nrm((1, N_HEAD * hd)),
            w_mlp=nrm((1, 2 * hd)),
            wp=nrm((N_HEAD * hd, out_dim)), bp=nrm((1, out_dim)),
        )

    def ffn_p(d):
        return dict(w1=nrm((d, d)), b1=nrm((1, d)),
                    w2=nrm((d, d)), b2=nrm((1, d)))

    return dict(
        emb=nrm((VOCAB, BERT_DIM), scale=1.0),
        attn_k=attn_p(BERT_DIM, hd_bert, HIDDEN_DIM),
        attn_q=attn_p(BERT_DIM, hd_bert, HIDDEN_DIM),
        attn_s1=attn_p(HIDDEN_DIM, hd_hid, HIDDEN_DIM),
        ffn_c=ffn_p(HIDDEN_DIM),
        ffn_t=ffn_p(HIDDEN_DIM),
        dense=dict(wd=nrm((3 * HIDDEN_DIM, POLARITIES)), bd=nrm((1, POLARITIES))),
    )


def _fold_attention_params(p, head_dim):
    """Fold w_mlp into K/Q projections (score weights, channel-expanded)."""
    E, HD = p['wk'].shape
    H = HD // head_dim
    w_kp = p['w_mlp'][0, :head_dim]          # pairs with kx
    w_qp = p['w_mlp'][0, head_dim:]          # pairs with qx

    def fold(w, b, part):
        w_h = jnp.einsum('ehd,d->eh', w.reshape(E, H, head_dim), part)   # (E, H)
        b_h = jnp.einsum('hd,d->h', b.reshape(H, head_dim), part)        # (H,)
        return (jnp.repeat(w_h, head_dim, axis=1),                       # (E, H*D)
                jnp.repeat(b_h, head_dim, axis=0).reshape(1, HD))        # (1, H*D)

    wks, bks = fold(p['wk'], p['bk'], w_kp)
    wqs, bqs = fold(p['wq'], p['bq'], w_qp)
    return [p['wk'], p['bk'], wks, bks, wqs, bqs, p['wp'], p['bp']]


# ------------------------------- forward ------------------------------------ #

@functools.partial(jax.jit, static_argnums=(3, 4))
def aen_bert_forward(params, context, target, ctx_max_len, tgt_max_len):
    """context, target: int32 (B, L); 0 == pad.  *_max_len: static ints."""
    B = context.shape[0]
    context_len = jnp.sum(context != 0, axis=-1).astype(jnp.float32)
    target_len = jnp.sum(target != 0, axis=-1).astype(jnp.float32)

    # SqueezeEmbedding: truncate to the (static) batch-max length.
    ctx_sq = context[:, :ctx_max_len]
    tgt_sq = target[:, :tgt_max_len]

    # TODO(synk): stand-in for the external BERT encoder (same output shape).
    ctx_emb = jnp.take(params['emb'], ctx_sq, axis=0)    # (B, Lc, bert_dim)
    tgt_emb = jnp.take(params['emb'], tgt_sq, axis=0)    # (B, Lt, bert_dim)

    hd_bert = BERT_DIM // N_HEAD
    hd_hid = HIDDEN_DIM // N_HEAD
    weights = (
        _fold_attention_params(params['attn_k'], hd_bert)
        + _fold_attention_params(params['attn_q'], hd_bert)
        + _fold_attention_params(params['attn_s1'], hd_hid)
        + [params['ffn_c'][k] for k in ('w1', 'b1', 'w2', 'b2')]
        + [params['ffn_t'][k] for k in ('w1', 'b1', 'w2', 'b2')]
        + [params['dense']['wd'], params['dense']['bd']]
    )

    clen = context_len.reshape(B, 1, 1)
    tlen = target_len.reshape(B, 1, 1)
    return aen_fused_call(ctx_emb, tgt_emb, clen, tlen, weights,
                          out_dim=POLARITIES)


# --------------------------------- main -------------------------------------- #

if __name__ == "__main__":
    key = jax.random.PRNGKey(0)
    k_par, k_ctx, k_tgt = jax.random.split(key, 3)

    B, L = 2, 10
    ctx_lens = jnp.array([8, 6])
    tgt_lens = jnp.array([4, 3])
    pos = jnp.arange(L)[None, :]

    context = jax.random.randint(k_ctx, (B, L), 1, VOCAB, dtype=jnp.int32)
    context = jnp.where(pos < ctx_lens[:, None], context, 0)
    target = jax.random.randint(k_tgt, (B, L), 1, VOCAB, dtype=jnp.int32)
    target = jnp.where(pos < tgt_lens[:, None], target, 0)

    params = init_params(k_par)

    # SqueezeEmbedding batch-max lengths (single host sync, outside jit).
    ctx_max_len = int(jnp.max(jnp.sum(context != 0, axis=-1)))
    tgt_max_len = int(jnp.max(jnp.sum(target != 0, axis=-1)))

    out = aen_bert_forward(params, context, target, ctx_max_len, tgt_max_len)
    out = jax.block_until_ready(out)

    assert out.shape == (B, POLARITIES), out.shape
    assert bool(jnp.all(jnp.isfinite(out)))
    print("KERNEL_OK")
</pallas_src>

<mosaic_0001>
module attributes {stable_mosaic.version = 11 : i64} {
  func.func @_aen_fused_kernel(%arg0: i32, %arg1: memref<1x8x32xf32, #tpu.memory_space<vmem>>, %arg2: memref<1x4x32xf32, #tpu.memory_space<vmem>>, %arg3: memref<1x1x1xf32, #tpu.memory_space<vmem>>, %arg4: memref<1x1x1xf32, #tpu.memory_space<vmem>>, %arg5: memref<32x32xf32, #tpu.memory_space<vmem>>, %arg6: memref<1x32xf32, #tpu.memory_space<vmem>>, %arg7: memref<32x32xf32, #tpu.memory_space<vmem>>, %arg8: memref<1x32xf32, #tpu.memory_space<vmem>>, %arg9: memref<32x32xf32, #tpu.memory_space<vmem>>, %arg10: memref<1x32xf32, #tpu.memory_space<vmem>>, %arg11: memref<32x32xf32, #tpu.memory_space<vmem>>, %arg12: memref<1x32xf32, #tpu.memory_space<vmem>>, %arg13: memref<32x32xf32, #tpu.memory_space<vmem>>, %arg14: memref<1x32xf32, #tpu.memory_space<vmem>>, %arg15: memref<32x32xf32, #tpu.memory_space<vmem>>, %arg16: memref<1x32xf32, #tpu.memory_space<vmem>>, %arg17: memref<32x32xf32, #tpu.memory_space<vmem>>, %arg18: memref<1x32xf32, #tpu.memory_space<vmem>>, %arg19: memref<32x32xf32, #tpu.memory_space<vmem>>, %arg20: memref<1x32xf32, #tpu.memory_space<vmem>>, %arg21: memref<32x32xf32, #tpu.memory_space<vmem>>, %arg22: memref<1x32xf32, #tpu.memory_space<vmem>>, %arg23: memref<32x32xf32, #tpu.memory_space<vmem>>, %arg24: memref<1x32xf32, #tpu.memory_space<vmem>>, %arg25: memref<32x32xf32, #tpu.memory_space<vmem>>, %arg26: memref<1x32xf32, #tpu.memory_space<vmem>>, %arg27: memref<32x32xf32, #tpu.memory_space<vmem>>, %arg28: memref<1x32xf32, #tpu.memory_space<vmem>>, %arg29: memref<32x32xf32, #tpu.memory_space<vmem>>, %arg30: memref<1x32xf32, #tpu.memory_space<vmem>>, %arg31: memref<32x32xf32, #tpu.memory_space<vmem>>, %arg32: memref<1x32xf32, #tpu.memory_space<vmem>>, %arg33: memref<32x32xf32, #tpu.memory_space<vmem>>, %arg34: memref<1x32xf32, #tpu.memory_space<vmem>>, %arg35: memref<32x32xf32, #tpu.memory_space<vmem>>, %arg36: memref<1x32xf32, #tpu.memory_space<vmem>>, %arg37: memref<96x3xf32, #tpu.memory_space<vmem>>, %arg38: memref<1x3xf32, #tpu.memory_space<vmem>>, %arg39: memref<1x1x3xf32, #tpu.memory_space<vmem>>) attributes {dimension_semantics = [#tpu.dimension_semantics<parallel>], iteration_bounds = array<i64: 2>, scalar_prefetch = 0 : i64, scratch_operands = 0 : i64, tpu.core_type = #tpu.core_type<tc>, window_params = [{transform_indices = @transform_0, window_bounds = array<i64: 1, 8, 32>}, {transform_indices = @transform_1, window_bounds = array<i64: 1, 4, 32>}, {transform_indices = @transform_2, window_bounds = array<i64: 1, 1, 1>}, {transform_indices = @transform_3, window_bounds = array<i64: 1, 1, 1>}, {pipeline_mode = #tpu.pipeline_mode<synchronous>, transform_indices = @transform_4, window_bounds = array<i64: 32, 32>}, {pipeline_mode = #tpu.pipeline_mode<synchronous>, transform_indices = @transform_5, window_bounds = array<i64: 1, 32>}, {pipeline_mode = #tpu.pipeline_mode<synchronous>, transform_indices = @transform_6, window_bounds = array<i64: 32, 32>}, {pipeline_mode = #tpu.pipeline_mode<synchronous>, transform_indices = @transform_7, window_bounds = array<i64: 1, 32>}, {pipeline_mode = #tpu.pipeline_mode<synchronous>, transform_indices = @transform_8, window_bounds = array<i64: 32, 32>}, {pipeline_mode = #tpu.pipeline_mode<synchronous>, transform_indices = @transform_9, window_bounds = array<i64: 1, 32>}, {pipeline_mode = #tpu.pipeline_mode<synchronous>, transform_indices = @transform_10, window_bounds = array<i64: 32, 32>}, {pipeline_mode = #tpu.pipeline_mode<synchronous>, transform_indices = @transform_11, window_bounds = array<i64: 1, 32>}, {pipeline_mode = #tpu.pipeline_mode<synchronous>, transform_indices = @transform_12, window_bounds = array<i64: 32, 32>}, {pipeline_mode = #tpu.pipeline_mode<synchronous>, transform_indices = @transform_13, window_bounds = array<i64: 1, 32>}, {pipeline_mode = #tpu.pipeline_mode<synchronous>, transform_indices = @transform_14, window_bounds = array<i64: 32, 32>}, {pipeline_mode = #tpu.pipeline_mode<synchronous>, transform_indices = @transform_15, window_bounds = array<i64: 1, 32>}, {pipeline_mode = #tpu.pipeline_mode<synchronous>, transform_indices = @transform_16, window_bounds = array<i64: 32, 32>}, {pipeline_mode = #tpu.pipeline_mode<synchronous>, transform_indices = @transform_17, window_bounds = array<i64: 1, 32>}, {pipeline_mode = #tpu.pipeline_mode<synchronous>, transform_indices = @transform_18, window_bounds = array<i64: 32, 32>}, {pipeline_mode = #tpu.pipeline_mode<synchronous>, transform_indices = @transform_19, window_bounds = array<i64: 1, 32>}, {pipeline_mode = #tpu.pipeline_mode<synchronous>, transform_indices = @transform_20, window_bounds = array<i64: 32, 32>}, {pipeline_mode = #tpu.pipeline_mode<synchronous>, transform_indices = @transform_21, window_bounds = array<i64: 1, 32>}, {pipeline_mode = #tpu.pipeline_mode<synchronous>, transform_indices = @transform_22, window_bounds = array<i64: 32, 32>}, {pipeline_mode = #tpu.pipeline_mode<synchronous>, transform_indices = @transform_23, window_bounds = array<i64: 1, 32>}, {pipeline_mode = #tpu.pipeline_mode<synchronous>, transform_indices = @transform_24, window_bounds = array<i64: 32, 32>}, {pipeline_mode = #tpu.pipeline_mode<synchronous>, transform_indices = @transform_25, window_bounds = array<i64: 1, 32>}, {pipeline_mode = #tpu.pipeline_mode<synchronous>, transform_indices = @transform_26, window_bounds = array<i64: 32, 32>}, {pipeline_mode = #tpu.pipeline_mode<synchronous>, transform_indices = @transform_27, window_bounds = array<i64: 1, 32>}, {pipeline_mode = #tpu.pipeline_mode<synchronous>, transform_indices = @transform_28, window_bounds = array<i64: 32, 32>}, {pipeline_mode = #tpu.pipeline_mode<synchronous>, transform_indices = @transform_29, window_bounds = array<i64: 1, 32>}, {pipeline_mode = #tpu.pipeline_mode<synchronous>, transform_indices = @transform_30, window_bounds = array<i64: 32, 32>}, {pipeline_mode = #tpu.pipeline_mode<synchronous>, transform_indices = @transform_31, window_bounds = array<i64: 1, 32>}, {pipeline_mode = #tpu.pipeline_mode<synchronous>, transform_indices = @transform_32, window_bounds = array<i64: 32, 32>}, {pipeline_mode = #tpu.pipeline_mode<synchronous>, transform_indices = @transform_33, window_bounds = array<i64: 1, 32>}, {pipeline_mode = #tpu.pipeline_mode<synchronous>, transform_indices = @transform_34, window_bounds = array<i64: 32, 32>}, {pipeline_mode = #tpu.pipeline_mode<synchronous>, transform_indices = @transform_35, window_bounds = array<i64: 1, 32>}, {pipeline_mode = #tpu.pipeline_mode<synchronous>, transform_indices = @transform_36, window_bounds = array<i64: 96, 3>}, {pipeline_mode = #tpu.pipeline_mode<synchronous>, transform_indices = @transform_37, window_bounds = array<i64: 1, 3>}, {transform_indices = @transform_38, window_bounds = array<i64: 1, 1, 3>}]} {
    %c0 = arith.constant 0 : index
    %c0_0 = arith.constant 0 : index
    %c0_1 = arith.constant 0 : index
    %0 = vector.load %arg1[%c0, %c0_0, %c0_1] : memref<1x8x32xf32, #tpu.memory_space<vmem>>, vector<1x8x32xf32>
    %1 = vector.shape_cast %0 : vector<1x8x32xf32> to vector<8x32xf32>
    %c0_2 = arith.constant 0 : index
    %c0_3 = arith.constant 0 : index
    %c0_4 = arith.constant 0 : index
    %2 = vector.load %arg2[%c0_2, %c0_3, %c0_4] : memref<1x4x32xf32, #tpu.memory_space<vmem>>, vector<1x4x32xf32>
    %3 = vector.shape_cast %2 : vector<1x4x32xf32> to vector<4x32xf32>
    %c0_5 = arith.constant 0 : index
    %c0_6 = arith.constant 0 : index
    %4 = vector.load %arg5[%c0_5, %c0_6] : memref<32x32xf32, #tpu.memory_space<vmem>>, vector<32x32xf32>
    %cst = arith.constant dense<0.000000e+00> : vector<8x32xf32>
    %5 = tpu.matmul %1, %4, %cst {dimension_numbers = #tpu.dot_dimension_numbers<[1], [0], [0], [1], [0, 0, 1, 1], [], []>} : vector<8x32xf32>, vector<32x32xf32>, vector<8x32xf32> -> vector<8x32xf32>
    %c0_7 = arith.constant 0 : index
    %c0_8 = arith.constant 0 : index
    %6 = vector.load %arg6[%c0_7, %c0_8] : memref<1x32xf32, #tpu.memory_space<vmem>>, vector<1x32xf32>
    %7 = vector.broadcast %6 : vector<1x32xf32> to vector<8x32xf32>
    %8 = arith.addf %5, %7 : vector<8x32xf32>
    %c0_9 = arith.constant 0 : index
    %c0_10 = arith.constant 0 : index
    %9 = vector.load %arg7[%c0_9, %c0_10] : memref<32x32xf32, #tpu.memory_space<vmem>>, vector<32x32xf32>
    %cst_11 = arith.constant dense<0.000000e+00> : vector<8x32xf32>
    %10 = tpu.matmul %1, %9, %cst_11 {dimension_numbers = #tpu.dot_dimension_numbers<[1], [0], [0], [1], [0, 0, 1, 1], [], []>} : vector<8x32xf32>, vector<32x32xf32>, vector<8x32xf32> -> vector<8x32xf32>
    %c0_12 = arith.constant 0 : index
    %c0_13 = arith.constant 0 : index
    %11 = vector.load %arg8[%c0_12, %c0_13] : memref<1x32xf32, #tpu.memory_space<vmem>>, vector<1x32xf32>
    %12 = vector.broadcast %11 : vector<1x32xf32> to vector<8x32xf32>
    %13 = arith.addf %10, %12 : vector<8x32xf32>
    %c0_14 = arith.constant 0 : index
    %c0_15 = arith.constant 0 : index
    %14 = vector.load %arg9[%c0_14, %c0_15] : memref<32x32xf32, #tpu.memory_space<vmem>>, vector<32x32xf32>
    %cst_16 = arith.constant dense<0.000000e+00> : vector<8x32xf32>
    %15 = tpu.matmul %1, %14, %cst_16 {dimension_numbers = #tpu.dot_dimension_numbers<[1], [0], [0], [1], [0, 0, 1, 1], [], []>} : vector<8x32xf32>, vector<32x32xf32>, vector<8x32xf32> -> vector<8x32xf32>
    %c0_17 = arith.constant 0 : index
    %c0_18 = arith.constant 0 : index
    %16 = vector.load %arg10[%c0_17, %c0_18] : memref<1x32xf32, #tpu.memory_space<vmem>>, vector<1x32xf32>
    %17 = vector.broadcast %16 : vector<1x32xf32> to vector<8x32xf32>
    %18 = arith.addf %15, %17 : vector<8x32xf32>
    %19 = vector.shape_cast %18 : vector<8x32xf32> to vector<8x1x32xf32>
    %20 = vector.shape_cast %13 : vector<8x32xf32> to vector<1x8x32xf32>
    %21 = vector.broadcast %19 : vector<8x1x32xf32> to vector<8x8x32xf32>
    %22 = vector.broadcast %20 : vector<1x8x32xf32> to vector<8x8x32xf32>
    %23 = arith.addf %21, %22 : vector<8x8x32xf32>
    %24 = math.tanh %23 : vector<8x8x32xf32>
    %25 = math.exp %24 : vector<8x8x32xf32>
    %cst_19 = arith.constant dense<0.000000e+00> : vector<8x32xf32>
    %26 = vector.multi_reduction <add>, %25, %cst_19 [1] : vector<8x8x32xf32> to vector<8x32xf32>
    %27 = vector.shape_cast %26 : vector<8x32xf32> to vector<8x1x32xf32>
    %28 = tpu.reciprocal %27 {approx = true} : vector<8x1x32xf32> -> vector<8x1x32xf32>
    %29 = vector.broadcast %28 : vector<8x1x32xf32> to vector<8x8x32xf32>
    %30 = arith.mulf %25, %29 : vector<8x8x32xf32>
    %31 = vector.shape_cast %8 : vector<8x32xf32> to vector<1x8x32xf32>
    %32 = vector.broadcast %31 : vector<1x8x32xf32> to vector<8x8x32xf32>
    %33 = arith.mulf %30, %32 : vector<8x8x32xf32>
    %cst_20 = arith.constant dense<0.000000e+00> : vector<8x32xf32>
    %34 = vector.multi_reduction <add>, %33, %cst_20 [1] : vector<8x8x32xf32> to vector<8x32xf32>
    %c0_21 = arith.constant 0 : index
    %c0_22 = arith.constant 0 : index
    %35 = vector.load %arg11[%c0_21, %c0_22] : memref<32x32xf32, #tpu.memory_space<vmem>>, vector<32x32xf32>
    %cst_23 = arith.constant dense<0.000000e+00> : vector<8x32xf32>
    %36 = tpu.matmul %34, %35, %cst_23 {dimension_numbers = #tpu.dot_dimension_numbers<[1], [0], [0], [1], [0, 0, 1, 1], [], []>} : vector<8x32xf32>, vector<32x32xf32>, vector<8x32xf32> -> vector<8x32xf32>
    %c0_24 = arith.constant 0 : index
    %c0_25 = arith.constant 0 : index
    %37 = vector.load %arg12[%c0_24, %c0_25] : memref<1x32xf32, #tpu.memory_space<vmem>>, vector<1x32xf32>
    %38 = vector.broadcast %37 : vector<1x32xf32> to vector<8x32xf32>
    %39 = arith.addf %36, %38 : vector<8x32xf32>
    %c0_26 = arith.constant 0 : index
    %c0_27 = arith.constant 0 : index
    %40 = vector.load %arg29[%c0_26, %c0_27] : memref<32x32xf32, #tpu.memory_space<vmem>>, vector<32x32xf32>
    %cst_28 = arith.constant dense<0.000000e+00> : vector<8x32xf32>
    %41 = tpu.matmul %39, %40, %cst_28 {dimension_numbers = #tpu.dot_dimension_numbers<[1], [0], [0], [1], [0, 0, 1, 1], [], []>} : vector<8x32xf32>, vector<32x32xf32>, vector<8x32xf32> -> vector<8x32xf32>
    %c0_29 = arith.constant 0 : index
    %c0_30 = arith.constant 0 : index
    %42 = vector.load %arg30[%c0_29, %c0_30] : memref<1x32xf32, #tpu.memory_space<vmem>>, vector<1x32xf32>
    %43 = vector.broadcast %42 : vector<1x32xf32> to vector<8x32xf32>
    %44 = arith.addf %41, %43 : vector<8x32xf32>
    %cst_31 = arith.constant 0.000000e+00 : f32
    %45 = vector.broadcast %cst_31 : f32 to vector<8x32xf32>
    %46 = arith.maximumf %44, %45 : vector<8x32xf32>
    %c0_32 = arith.constant 0 : index
    %c0_33 = arith.constant 0 : index
    %47 = vector.load %arg31[%c0_32, %c0_33] : memref<32x32xf32, #tpu.memory_space<vmem>>, vector<32x32xf32>
    %cst_34 = arith.constant dense<0.000000e+00> : vector<8x32xf32>
    %48 = tpu.matmul %46, %47, %cst_34 {dimension_numbers = #tpu.dot_dimension_numbers<[1], [0], [0], [1], [0, 0, 1, 1], [], []>} : vector<8x32xf32>, vector<32x32xf32>, vector<8x32xf32> -> vector<8x32xf32>
    %c0_35 = arith.constant 0 : index
    %c0_36 = arith.constant 0 : index
    %49 = vector.load %arg32[%c0_35, %c0_36] : memref<1x32xf32, #tpu.memory_space<vmem>>, vector<1x32xf32>
    %50 = vector.broadcast %49 : vector<1x32xf32> to vector<8x32xf32>
    %51 = arith.addf %48, %50 : vector<8x32xf32>
    %c0_37 = arith.constant 0 : index
    %c0_38 = arith.constant 0 : index
    %52 = vector.load %arg13[%c0_37, %c0_38] : memref<32x32xf32, #tpu.memory_space<vmem>>, vector<32x32xf32>
    %cst_39 = arith.constant dense<0.000000e+00> : vector<8x32xf32>
    %53 = tpu.matmul %1, %52, %cst_39 {dimension_numbers = #tpu.dot_dimension_numbers<[1], [0], [0], [1], [0, 0, 1, 1], [], []>} : vector<8x32xf32>, vector<32x32xf32>, vector<8x32xf32> -> vector<8x32xf32>
    %c0_40 = arith.constant 0 : index
    %c0_41 = arith.constant 0 : index
    %54 = vector.load %arg14[%c0_40, %c0_41] : memref<1x32xf32, #tpu.memory_space<vmem>>, vector<1x32xf32>
    %55 = vector.broadcast %54 : vector<1x32xf32> to vector<8x32xf32>
    %56 = arith.addf %53, %55 : vector<8x32xf32>
    %c0_42 = arith.constant 0 : index
    %c0_43 = arith.constant 0 : index
    %57 = vector.load %arg15[%c0_42, %c0_43] : memref<32x32xf32, #tpu.memory_space<vmem>>, vector<32x32xf32>
    %cst_44 = arith.constant dense<0.000000e+00> : vector<8x32xf32>
    %58 = tpu.matmul %1, %57, %cst_44 {dimension_numbers = #tpu.dot_dimension_numbers<[1], [0], [0], [1], [0, 0, 1, 1], [], []>} : vector<8x32xf32>, vector<32x32xf32>, vector<8x32xf32> -> vector<8x32xf32>
    %c0_45 = arith.constant 0 : index
    %c0_46 = arith.constant 0 : index
    %59 = vector.load %arg16[%c0_45, %c0_46] : memref<1x32xf32, #tpu.memory_space<vmem>>, vector<1x32xf32>
    %60 = vector.broadcast %59 : vector<1x32xf32> to vector<8x32xf32>
    %61 = arith.addf %58, %60 : vector<8x32xf32>
    %c0_47 = arith.constant 0 : index
    %c0_48 = arith.constant 0 : index
    %62 = vector.load %arg17[%c0_47, %c0_48] : memref<32x32xf32, #tpu.memory_space<vmem>>, vector<32x32xf32>
    %cst_49 = arith.constant dense<0.000000e+00> : vector<4x32xf32>
    %63 = tpu.matmul %3, %62, %cst_49 {dimension_numbers = #tpu.dot_dimension_numbers<[1], [0], [0], [1], [0, 0, 1, 1], [], []>} : vector<4x32xf32>, vector<32x32xf32>, vector<4x32xf32> -> vector<4x32xf32>
    %c0_50 = arith.constant 0 : index
    %c0_51 = arith.constant 0 : index
    %64 = vector.load %arg18[%c0_50, %c0_51] : memref<1x32xf32, #tpu.memory_space<vmem>>, vector<1x32xf32>
    %65 = vector.broadcast %64 : vector<1x32xf32> to vector<4x32xf32>
    %66 = arith.addf %63, %65 : vector<4x32xf32>
    %67 = vector.shape_cast %66 : vector<4x32xf32> to vector<4x1x32xf32>
    %68 = vector.shape_cast %61 : vector<8x32xf32> to vector<1x8x32xf32>
    %69 = vector.broadcast %67 : vector<4x1x32xf32> to vector<4x8x32xf32>
    %70 = vector.broadcast %68 : vector<1x8x32xf32> to vector<4x8x32xf32>
    %71 = arith.addf %69, %70 : vector<4x8x32xf32>
    %72 = math.tanh %71 : vector<4x8x32xf32>
    %73 = math.exp %72 : vector<4x8x32xf32>
    %cst_52 = arith.constant dense<0.000000e+00> : vector<4x32xf32>
    %74 = vector.multi_reduction <add>, %73, %cst_52 [1] : vector<4x8x32xf32> to vector<4x32xf32>
    %75 = vector.shape_cast %74 : vector<4x32xf32> to vector<4x1x32xf32>
    %76 = tpu.reciprocal %75 {approx = true} : vector<4x1x32xf32> -> vector<4x1x32xf32>
    %77 = vector.broadcast %76 : vector<4x1x32xf32> to vector<4x8x32xf32>
    %78 = arith.mulf %73, %77 : vector<4x8x32xf32>
    %79 = vector.shape_cast %56 : vector<8x32xf32> to vector<1x8x32xf32>
    %80 = vector.broadcast %79 : vector<1x8x32xf32> to vector<4x8x32xf32>
    %81 = arith.mulf %78, %80 : vector<4x8x32xf32>
    %cst_53 = arith.constant dense<0.000000e+00> : vector<4x32xf32>
    %82 = vector.multi_reduction <add>, %81, %cst_53 [1] : vector<4x8x32xf32> to vector<4x32xf32>
    %c0_54 = arith.constant 0 : index
    %c0_55 = arith.constant 0 : index
    %83 = vector.load %arg19[%c0_54, %c0_55] : memref<32x32xf32, #tpu.memory_space<vmem>>, vector<32x32xf32>
    %cst_56 = arith.constant dense<0.000000e+00> : vector<4x32xf32>
    %84 = tpu.matmul %82, %83, %cst_56 {dimension_numbers = #tpu.dot_dimension_numbers<[1], [0], [0], [1], [0, 0, 1, 1], [], []>} : vector<4x32xf32>, vector<32x32xf32>, vector<4x32xf32> -> vector<4x32xf32>
    %c0_57 = arith.constant 0 : index
    %c0_58 = arith.constant 0 : index
    %85 = vector.load %arg20[%c0_57, %c0_58] : memref<1x32xf32, #tpu.memory_space<vmem>>, vector<1x32xf32>
    %86 = vector.broadcast %85 : vector<1x32xf32> to vector<4x32xf32>
    %87 = arith.addf %84, %86 : vector<4x32xf32>
    %c0_59 = arith.constant 0 : index
    %c0_60 = arith.constant 0 : index
    %88 = vector.load %arg33[%c0_59, %c0_60] : memref<32x32xf32, #tpu.memory_space<vmem>>, vector<32x32xf32>
    %cst_61 = arith.constant dense<0.000000e+00> : vector<4x32xf32>
    %89 = tpu.matmul %87, %88, %cst_61 {dimension_numbers = #tpu.dot_dimension_numbers<[1], [0], [0], [1], [0, 0, 1, 1], [], []>} : vector<4x32xf32>, vector<32x32xf32>, vector<4x32xf32> -> vector<4x32xf32>
    %c0_62 = arith.constant 0 : index
    %c0_63 = arith.constant 0 : index
    %90 = vector.load %arg34[%c0_62, %c0_63] : memref<1x32xf32, #tpu.memory_space<vmem>>, vector<1x32xf32>
    %91 = vector.broadcast %90 : vector<1x32xf32> to vector<4x32xf32>
    %92 = arith.addf %89, %91 : vector<4x32xf32>
    %cst_64 = arith.constant 0.000000e+00 : f32
    %93 = vector.broadcast %cst_64 : f32 to vector<4x32xf32>
    %94 = arith.maximumf %92, %93 : vector<4x32xf32>
    %c0_65 = arith.constant 0 : index
    %c0_66 = arith.constant 0 : index
    %95 = vector.load %arg35[%c0_65, %c0_66] : memref<32x32xf32, #tpu.memory_space<vmem>>, vector<32x32xf32>
    %cst_67 = arith.constant dense<0.000000e+00> : vector<4x32xf32>
    %96 = tpu.matmul %94, %95, %cst_67 {dimension_numbers = #tpu.dot_dimension_numbers<[1], [0], [0], [1], [0, 0, 1, 1], [], []>} : vector<4x32xf32>, vector<32x32xf32>, vector<4x32xf32> -> vector<4x32xf32>
    %c0_68 = arith.constant 0 : index
    %c0_69 = arith.constant 0 : index
    %97 = vector.load %arg36[%c0_68, %c0_69] : memref<1x32xf32, #tpu.memory_space<vmem>>, vector<1x32xf32>
    %98 = vector.broadcast %97 : vector<1x32xf32> to vector<4x32xf32>
    %99 = arith.addf %96, %98 : vector<4x32xf32>
    %c0_70 = arith.constant 0 : index
    %c0_71 = arith.constant 0 : index
    %100 = vector.load %arg21[%c0_70, %c0_71] : memref<32x32xf32, #tpu.memory_space<vmem>>, vector<32x32xf32>
    %cst_72 = arith.constant dense<0.000000e+00> : vector<8x32xf32>
    %101 = tpu.matmul %51, %100, %cst_72 {dimension_numbers = #tpu.dot_dimension_numbers<[1], [0], [0], [1], [0, 0, 1, 1], [], []>} : vector<8x32xf32>, vector<32x32xf32>, vector<8x32xf32> -> vector<8x32xf32>
    %c0_73 = arith.constant 0 : index
    %c0_74 = arith.constant 0 : index
    %102 = vector.load %arg22[%c0_73, %c0_74] : memref<1x32xf32, #tpu.memory_space<vmem>>, vector<1x32xf32>
    %103 = vector.broadcast %102 : vector<1x32xf32> to vector<8x32xf32>
    %104 = arith.addf %101, %103 : vector<8x32xf32>
    %c0_75 = arith.constant 0 : index
    %c0_76 = arith.constant 0 : index
    %105 = vector.load %arg23[%c0_75, %c0_76] : memref<32x32xf32, #tpu.memory_space<vmem>>, vector<32x32xf32>
    %cst_77 = arith.constant dense<0.000000e+00> : vector<8x32xf32>
    %106 = tpu.matmul %51, %105, %cst_77 {dimension_numbers = #tpu.dot_dimension_numbers<[1], [0], [0], [1], [0, 0, 1, 1], [], []>} : vector<8x32xf32>, vector<32x32xf32>, vector<8x32xf32> -> vector<8x32xf32>
    %c0_78 = arith.constant 0 : index
    %c0_79 = arith.constant 0 : index
    %107 = vector.load %arg24[%c0_78, %c0_79] : memref<1x32xf32, #tpu.memory_space<vmem>>, vector<1x32xf32>
    %108 = vector.broadcast %107 : vector<1x32xf32> to vector<8x32xf32>
    %109 = arith.addf %106, %108 : vector<8x32xf32>
    %c0_80 = arith.constant 0 : index
    %c0_81 = arith.constant 0 : index
    %110 = vector.load %arg25[%c0_80, %c0_81] : memref<32x32xf32, #tpu.memory_space<vmem>>, vector<32x32xf32>
    %cst_82 = arith.constant dense<0.000000e+00> : vector<4x32xf32>
    %111 = tpu.matmul %99, %110, %cst_82 {dimension_numbers = #tpu.dot_dimension_numbers<[1], [0], [0], [1], [0, 0, 1, 1], [], []>} : vector<4x32xf32>, vector<32x32xf32>, vector<4x32xf32> -> vector<4x32xf32>
    %c0_83 = arith.constant 0 : index
    %c0_84 = arith.constant 0 : index
    %112 = vector.load %arg26[%c0_83, %c0_84] : memref<1x32xf32, #tpu.memory_space<vmem>>, vector<1x32xf32>
    %113 = vector.broadcast %112 : vector<1x32xf32> to vector<4x32xf32>
    %114 = arith.addf %111, %113 : vector<4x32xf32>
    %115 = vector.shape_cast %114 : vector<4x32xf32> to vector<4x1x32xf32>
    %116 = vector.shape_cast %109 : vector<8x32xf32> to vector<1x8x32xf32>
    %117 = vector.broadcast %115 : vector<4x1x32xf32> to vector<4x8x32xf32>
    %118 = vector.broadcast %116 : vector<1x8x32xf32> to vector<4x8x32xf32>
    %119 = arith.addf %117, %118 : vector<4x8x32xf32>
    %120 = math.tanh %119 : vector<4x8x32xf32>
    %121 = math.exp %120 : vector<4x8x32xf32>
    %cst_85 = arith.constant dense<0.000000e+00> : vector<4x32xf32>
    %122 = vector.multi_reduction <add>, %121, %cst_85 [1] : vector<4x8x32xf32> to vector<4x32xf32>
    %123 = vector.shape_cast %122 : vector<4x32xf32> to vector<4x1x32xf32>
    %124 = tpu.reciprocal %123 {approx = true} : vector<4x1x32xf32> -> vector<4x1x32xf32>
    %125 = vector.broadcast %124 : vector<4x1x32xf32> to vector<4x8x32xf32>
    %126 = arith.mulf %121, %125 : vector<4x8x32xf32>
    %127 = vector.shape_cast %104 : vector<8x32xf32> to vector<1x8x32xf32>
    %128 = vector.broadcast %127 : vector<1x8x32xf32> to vector<4x8x32xf32>
    %129 = arith.mulf %126, %128 : vector<4x8x32xf32>
    %cst_86 = arith.constant dense<0.000000e+00> : vector<4x32xf32>
    %130 = vector.multi_reduction <add>, %129, %cst_86 [1] : vector<4x8x32xf32> to vector<4x32xf32>
    %c0_87 = arith.constant 0 : index
    %c0_88 = arith.constant 0 : index
    %131 = vector.load %arg27[%c0_87, %c0_88] : memref<32x32xf32, #tpu.memory_space<vmem>>, vector<32x32xf32>
    %cst_89 = arith.constant dense<0.000000e+00> : vector<4x32xf32>
    %132 = tpu.matmul %130, %131, %cst_89 {dimension_numbers = #tpu.dot_dimension_numbers<[1], [0], [0], [1], [0, 0, 1, 1], [], []>} : vector<4x32xf32>, vector<32x32xf32>, vector<4x32xf32> -> vector<4x32xf32>
    %c0_90 = arith.constant 0 : index
    %c0_91 = arith.constant 0 : index
    %133 = vector.load %arg28[%c0_90, %c0_91] : memref<1x32xf32, #tpu.memory_space<vmem>>, vector<1x32xf32>
    %134 = vector.broadcast %133 : vector<1x32xf32> to vector<4x32xf32>
    %135 = arith.addf %132, %134 : vector<4x32xf32>
    %c0_92 = arith.constant 0 : index
    %c0_93 = arith.constant 0 : index
    %c0_94 = arith.constant 0 : index
    %136 = vector.load %arg3[%c0_92, %c0_93, %c0_94] : memref<1x1x1xf32, #tpu.memory_space<vmem>>, vector<1x1x1xf32>
    %137 = vector.shape_cast %136 : vector<1x1x1xf32> to vector<1x1xf32>
    %138 = tpu.reciprocal %137 {approx = true} : vector<1x1xf32> -> vector<1x1xf32>
    %c0_95 = arith.constant 0 : index
    %c0_96 = arith.constant 0 : index
    %c0_97 = arith.constant 0 : index
    %139 = vector.load %arg4[%c0_95, %c0_96, %c0_97] : memref<1x1x1xf32, #tpu.memory_space<vmem>>, vector<1x1x1xf32>
    %140 = vector.shape_cast %139 : vector<1x1x1xf32> to vector<1x1xf32>
    %141 = tpu.reciprocal %140 {approx = true} : vector<1x1xf32> -> vector<1x1xf32>
    %cst_98 = arith.constant dense<0.000000e+00> : vector<32xf32>
    %142 = vector.multi_reduction <add>, %51, %cst_98 [0] : vector<8x32xf32> to vector<32xf32>
    %143 = vector.shape_cast %142 : vector<32xf32> to vector<1x32xf32>
    %144 = vector.broadcast %138 : vector<1x1xf32> to vector<1x32xf32>
    %145 = arith.mulf %143, %144 : vector<1x32xf32>
    %cst_99 = arith.constant dense<0.000000e+00> : vector<32xf32>
    %146 = vector.multi_reduction <add>, %99, %cst_99 [0] : vector<4x32xf32> to vector<32xf32>
    %147 = vector.shape_cast %146 : vector<32xf32> to vector<1x32xf32>
    %148 = vector.broadcast %141 : vector<1x1xf32> to vector<1x32xf32>
    %149 = arith.mulf %147, %148 : vector<1x32xf32>
    %cst_100 = arith.constant dense<0.000000e+00> : vector<32xf32>
    %150 = vector.multi_reduction <add>, %135, %cst_100 [0] : vector<4x32xf32> to vector<32xf32>
    %151 = vector.shape_cast %150 : vector<32xf32> to vector<1x32xf32>
    %152 = vector.broadcast %138 : vector<1x1xf32> to vector<1x32xf32>
    %153 = arith.mulf %151, %152 : vector<1x32xf32>
    %154 = tpu.concatenate %145, %153, %149 in 1 : vector<1x32xf32>, vector<1x32xf32>, vector<1x32xf32> -> vector<1x96xf32>
    %c0_101 = arith.constant 0 : index
    %c0_102 = arith.constant 0 : index
    %155 = vector.load %arg37[%c0_101, %c0_102] : memref<96x3xf32, #tpu.memory_space<vmem>>, vector<96x3xf32>
    %cst_103 = arith.constant dense<0.000000e+00> : vector<1x3xf32>
    %156 = tpu.matmul %154, %155, %cst_103 {dimension_numbers = #tpu.dot_dimension_numbers<[1], [0], [0], [1], [0, 0, 1, 1], [], []>} : vector<1x96xf32>, vector<96x3xf32>, vector<1x3xf32> -> vector<1x3xf32>
    %c0_104 = arith.constant 0 : index
    %c0_105 = arith.constant 0 : index
    %157 = vector.load %arg38[%c0_104, %c0_105] : memref<1x3xf32, #tpu.memory_space<vmem>>, vector<1x3xf32>
    %158 = arith.addf %156, %157 : vector<1x3xf32>
    %c0_106 = arith.constant 0 : index
    %c0_107 = arith.constant 0 : index
    %c0_108 = arith.constant 0 : index
    %159 = vector.load %arg39[%c0_106, %c0_107, %c0_108] : memref<1x1x3xf32, #tpu.memory_space<vmem>>, vector<1x1x3xf32>
    %160 = vector.shape_cast %159 : vector<1x1x3xf32> to vector<1x3xf32>
    %161 = vector.shape_cast %158 : vector<1x3xf32> to vector<1x1x3xf32>
    tpu.vector_store %arg39[%c0_106, %c0_107, %c0_108], %161 {strides = array<i32>} : memref<1x1x3xf32, #tpu.memory_space<vmem>>, vector<1x1x3xf32>,
    return
  }
  func.func @transform_0(%arg0: i32) -> (i32, i32, i32) {
    %c0_i32 = arith.constant 0 : i32
    %c0_i32_0 = arith.constant 0 : i32
    %c0_i32_1 = arith.constant 0 : i32
    return %arg0, %c0_i32, %c0_i32_0 : i32, i32, i32
  }
  func.func @transform_1(%arg0: i32) -> (i32, i32, i32) {
    %c0_i32 = arith.constant 0 : i32
    %c0_i32_0 = arith.constant 0 : i32
    %c0_i32_1 = arith.constant 0 : i32
    return %arg0, %c0_i32, %c0_i32_0 : i32, i32, i32
  }
  func.func @transform_2(%arg0: i32) -> (i32, i32, i32) {
    %c0_i32 = arith.constant 0 : i32
    %c0_i32_0 = arith.constant 0 : i32
    %c0_i32_1 = arith.constant 0 : i32
    return %arg0, %c0_i32, %c0_i32_0 : i32, i32, i32
  }
  func.func @transform_3(%arg0: i32) -> (i32, i32, i32) {
    %c0_i32 = arith.constant 0 : i32
    %c0_i32_0 = arith.constant 0 : i32
    %c0_i32_1 = arith.constant 0 : i32
    return %arg0, %c0_i32, %c0_i32_0 : i32, i32, i32
  }
  func.func @transform_4(%arg0: i32) -> (i32, i32) {
    %c0_i32 = arith.constant 0 : i32
    %c0_i32_0 = arith.constant 0 : i32
    %c0_i32_1 = arith.constant 0 : i32
    return %c0_i32, %c0_i32_0 : i32, i32
  }
  func.func @transform_5(%arg0: i32) -> (i32, i32) {
    %c0_i32 = arith.constant 0 : i32
    %c0_i32_0 = arith.constant 0 : i32
    %c0_i32_1 = arith.constant 0 : i32
    return %c0_i32, %c0_i32_0 : i32, i32
  }
  func.func @transform_6(%arg0: i32) -> (i32, i32) {
    %c0_i32 = arith.constant 0 : i32
    %c0_i32_0 = arith.constant 0 : i32
    %c0_i32_1 = arith.constant 0 : i32
    return %c0_i32, %c0_i32_0 : i32, i32
  }
  func.func @transform_7(%arg0: i32) -> (i32, i32) {
    %c0_i32 = arith.constant 0 : i32
    %c0_i32_0 = arith.constant 0 : i32
    %c0_i32_1 = arith.constant 0 : i32
    return %c0_i32, %c0_i32_0 : i32, i32
  }
  func.func @transform_8(%arg0: i32) -> (i32, i32) {
    %c0_i32 = arith.constant 0 : i32
    %c0_i32_0 = arith.constant 0 : i32
    %c0_i32_1 = arith.constant 0 : i32
    return %c0_i32, %c0_i32_0 : i32, i32
  }
  func.func @transform_9(%arg0: i32) -> (i32, i32) {
    %c0_i32 = arith.constant 0 : i32
    %c0_i32_0 = arith.constant 0 : i32
    %c0_i32_1 = arith.constant 0 : i32
    return %c0_i32, %c0_i32_0 : i32, i32
  }
  func.func @transform_10(%arg0: i32) -> (i32, i32) {
    %c0_i32 = arith.constant 0 : i32
    %c0_i32_0 = arith.constant 0 : i32
    %c0_i32_1 = arith.constant 0 : i32
    return %c0_i32, %c0_i32_0 : i32, i32
  }
  func.func @transform_11(%arg0: i32) -> (i32, i32) {
    %c0_i32 = arith.constant 0 : i32
    %c0_i32_0 = arith.constant 0 : i32
    %c0_i32_1 = arith.constant 0 : i32
    return %c0_i32, %c0_i32_0 : i32, i32
  }
  func.func @transform_12(%arg0: i32) -> (i32, i32) {
    %c0_i32 = arith.constant 0 : i32
    %c0_i32_0 = arith.constant 0 : i32
    %c0_i32_1 = arith.constant 0 : i32
    return %c0_i32, %c0_i32_0 : i32, i32
  }
  func.func @transform_13(%arg0: i32) -> (i32, i32) {
    %c0_i32 = arith.constant 0 : i32
    %c0_i32_0 = arith.constant 0 : i32
    %c0_i32_1 = arith.constant 0 : i32
    return %c0_i32, %c0_i32_0 : i32, i32
  }
  func.func @transform_14(%arg0: i32) -> (i32, i32) {
    %c0_i32 = arith.constant 0 : i32
    %c0_i32_0 = arith.constant 0 : i32
    %c0_i32_1 = arith.constant 0 : i32
    return %c0_i32, %c0_i32_0 : i32, i32
  }
  func.func @transform_15(%arg0: i32) -> (i32, i32) {
    %c0_i32 = arith.constant 0 : i32
    %c0_i32_0 = arith.constant 0 : i32
    %c0_i32_1 = arith.constant 0 : i32
    return %c0_i32, %c0_i32_0 : i32, i32
  }
  func.func @transform_16(%arg0: i32) -> (i32, i32) {
    %c0_i32 = arith.constant 0 : i32
    %c0_i32_0 = arith.constant 0 : i32
    %c0_i32_1 = arith.constant 0 : i32
    return %c0_i32, %c0_i32_0 : i32, i32
  }
  func.func @transform_17(%arg0: i32) -> (i32, i32) {
    %c0_i32 = arith.constant 0 : i32
    %c0_i32_0 = arith.constant 0 : i32
    %c0_i32_1 = arith.constant 0 : i32
    return %c0_i32, %c0_i32_0 : i32, i32
  }
  func.func @transform_18(%arg0: i32) -> (i32, i32) {
    %c0_i32 = arith.constant 0 : i32
    %c0_i32_0 = arith.constant 0 : i32
    %c0_i32_1 = arith.constant 0 : i32
    return %c0_i32, %c0_i32_0 : i32, i32
  }
  func.func @transform_19(%arg0: i32) -> (i32, i32) {
    %c0_i32 = arith.constant 0 : i32
    %c0_i32_0 = arith.constant 0 : i32
    %c0_i32_1 = arith.constant 0 : i32
    return %c0_i32, %c0_i32_0 : i32, i32
  }
  func.func @transform_20(%arg0: i32) -> (i32, i32) {
    %c0_i32 = arith.constant 0 : i32
    %c0_i32_0 = arith.constant 0 : i32
    %c0_i32_1 = arith.constant 0 : i32
    return %c0_i32, %c0_i32_0 : i32, i32
  }
  func.func @transform_21(%arg0: i32) -> (i32, i32) {
    %c0_i32 = arith.constant 0 : i32
    %c0_i32_0 = arith.constant 0 : i32
    %c0_i32_1 = arith.constant 0 : i32
    return %c0_i32, %c0_i32_0 : i32, i32
  }
  func.func @transform_22(%arg0: i32) -> (i32, i32) {
    %c0_i32 = arith.constant 0 : i32
    %c0_i32_0 = arith.constant 0 : i32
    %c0_i32_1 = arith.constant 0 : i32
    return %c0_i32, %c0_i32_0 : i32, i32
  }
  func.func @transform_23(%arg0: i32) -> (i32, i32) {
    %c0_i32 = arith.constant 0 : i32
    %c0_i32_0 = arith.constant 0 : i32
    %c0_i32_1 = arith.constant 0 : i32
    return %c0_i32, %c0_i32_0 : i32, i32
  }
  func.func @transform_24(%arg0: i32) -> (i32, i32) {
    %c0_i32 = arith.constant 0 : i32
    %c0_i32_0 = arith.constant 0 : i32
    %c0_i32_1 = arith.constant 0 : i32
    return %c0_i32, %c0_i32_0 : i32, i32
  }
  func.func @transform_25(%arg0: i32) -> (i32, i32) {
    %c0_i32 = arith.constant 0 : i32
    %c0_i32_0 = arith.constant 0 : i32
    %c0_i32_1 = arith.constant 0 : i32
    return %c0_i32, %c0_i32_0 : i32, i32
  }
  func.func @transform_26(%arg0: i32) -> (i32, i32) {
    %c0_i32 = arith.constant 0 : i32
    %c0_i32_0 = arith.constant 0 : i32
    %c0_i32_1 = arith.constant 0 : i32
    return %c0_i32, %c0_i32_0 : i32, i32
  }
  func.func @transform_27(%arg0: i32) -> (i32, i32) {
    %c0_i32 = arith.constant 0 : i32
    %c0_i32_0 = arith.constant 0 : i32
    %c0_i32_1 = arith.constant 0 : i32
    return %c0_i32, %c0_i32_0 : i32, i32
  }
  func.func @transform_28(%arg0: i32) -> (i32, i32) {
    %c0_i32 = arith.constant 0 : i32
    %c0_i32_0 = arith.constant 0 : i32
    %c0_i32_1 = arith.constant 0 : i32
    return %c0_i32, %c0_i32_0 : i32, i32
  }
  func.func @transform_29(%arg0: i32) -> (i32, i32) {
    %c0_i32 = arith.constant 0 : i32
    %c0_i32_0 = arith.constant 0 : i32
    %c0_i32_1 = arith.constant 0 : i32
    return %c0_i32, %c0_i32_0 : i32, i32
  }
  func.func @transform_30(%arg0: i32) -> (i32, i32) {
    %c0_i32 = arith.constant 0 : i32
    %c0_i32_0 = arith.constant 0 : i32
    %c0_i32_1 = arith.constant 0 : i32
    return %c0_i32, %c0_i32_0 : i32, i32
  }
  func.func @transform_31(%arg0: i32) -> (i32, i32) {
    %c0_i32 = arith.constant 0 : i32
    %c0_i32_0 = arith.constant 0 : i32
    %c0_i32_1 = arith.constant 0 : i32
    return %c0_i32, %c0_i32_0 : i32, i32
  }
  func.func @transform_32(%arg0: i32) -> (i32, i32) {
    %c0_i32 = arith.constant 0 : i32
    %c0_i32_0 = arith.constant 0 : i32
    %c0_i32_1 = arith.constant 0 : i32
    return %c0_i32, %c0_i32_0 : i32, i32
  }
  func.func @transform_33(%arg0: i32) -> (i32, i32) {
    %c0_i32 = arith.constant 0 : i32
    %c0_i32_0 = arith.constant 0 : i32
    %c0_i32_1 = arith.constant 0 : i32
    return %c0_i32, %c0_i32_0 : i32, i32
  }
  func.func @transform_34(%arg0: i32) -> (i32, i32) {
    %c0_i32 = arith.constant 0 : i32
    %c0_i32_0 = arith.constant 0 : i32
    %c0_i32_1 = arith.constant 0 : i32
    return %c0_i32, %c0_i32_0 : i32, i32
  }
  func.func @transform_35(%arg0: i32) -> (i32, i32) {
    %c0_i32 = arith.constant 0 : i32
    %c0_i32_0 = arith.constant 0 : i32
    %c0_i32_1 = arith.constant 0 : i32
    return %c0_i32, %c0_i32_0 : i32, i32
  }
  func.func @transform_36(%arg0: i32) -> (i32, i32) {
    %c0_i32 = arith.constant 0 : i32
    %c0_i32_0 = arith.constant 0 : i32
    %c0_i32_1 = arith.constant 0 : i32
    return %c0_i32, %c0_i32_0 : i32, i32
  }
  func.func @transform_37(%arg0: i32) -> (i32, i32) {
    %c0_i32 = arith.constant 0 : i32
    %c0_i32_0 = arith.constant 0 : i32
    %c0_i32_1 = arith.constant 0 : i32
    return %c0_i32, %c0_i32_0 : i32, i32
  }
  func.func @transform_38(%arg0: i32) -> (i32, i32, i32) {
    %c0_i32 = arith.constant 0 : i32
    %c0_i32_0 = arith.constant 0 : i32
    %c0_i32_1 = arith.constant 0 : i32
    return %arg0, %c0_i32, %c0_i32_0 : i32, i32, i32
  }
}

</mosaic_0001>

<bundles_post_ra>
// kernel: aen_bert_forward.1
= control target key start
LH: loop header
LB: loop body
LE: loop exit
PB: predicated region body
PF: predicated region fallthrough
CT: control target
= control target key end

     0   :  { %s4061_s6 = smov 1   ;;  %s4062_s10 = smov 2   ;;  %s4726_s0 = inlined_call_operand.smem [shape: u32[39], index: -1, kind: input, shape index: {}] }
   0x1   :  { %s4115_s5 = sld [smem:[%s4726_s0]]   ;;  %s4063_s14 = smov 3  }
   0x2   :  { %s4120_s9 = sld [smem:[%s4726_s0 + %s4061_s6]]   ;;  %s4064_s18 = smov 4  }
   0x3   :  { %s4125_s13 = sld [smem:[%s4726_s0 + %s4062_s10]]   ;;  %s4065_s22 = smov 5  }
   0x4   :  { %s4130_s17 = sld [smem:[%s4726_s0 + %s4063_s14]]   ;;  %s4066_s26 = smov 6  }
   0x5   :  { %s4135_s21 = sld [smem:[%s4726_s0 + %s4064_s18]]   ;;  %s4067_s30 = smov 7  }
   0x6   :  { %s4140_s25 = sld [smem:[%s4726_s0 + %s4065_s22]]   ;;  %s4068_s4 = smov 8  }
   0x7   :  { %4743 = sst [smem:[#allocation5_spill]] %s4115_s5  ;;  %s4069_s10 = smov 9  }
   0x8   :  { %4744 = sst [smem:[#allocation6_spill]] %s4120_s9  ;;  %s4070_s15 = smov 10  }
   0x9   :  { %4745 = sst [smem:[#allocation7_spill]] %s4125_s13  ;;  %s4071_s20 = smov 11  }
   0xa   :  { %4746 = sst [smem:[#allocation8_spill]] %s4130_s17  ;;  %s4073_s1 = smov 13  }
   0xb   :  { %s4145_s29 = sld [smem:[%s4726_s0 + %s4066_s26]]   ;;  %s4072_s26 = smov 12  }
   0xc   :  { %s4150_s3 = sld [smem:[%s4726_s0 + %s4067_s30]]   ;;  %s4074_s7 = smov 14  }
   0xd   :  { %s4155_s8 = sld [smem:[%s4726_s0 + %s4068_s4]]   ;;  %s4076_s22 = smov 16  }
   0xe   :  { %s4160_s14 = sld [smem:[%s4726_s0 + %s4069_s10]]   ;;  %s4077_s28 = smov 17  }
   0xf   :  { %s4165_s19 = sld [smem:[%s4726_s0 + %s4070_s15]]   ;;  %s4075_s15 = smov 15  }
  0x10   :  { %s4170_s24 = sld [smem:[%s4726_s0 + %s4071_s20]]  }
  0x11   :  { %s4175_s30 = sld [smem:[%s4726_s0 + %s4072_s26]]  }
  0x12   :  { %4747 = sst [smem:[#allocation9_spill]] %s4150_s3 }
  0x13   :  { %4748 = sst [smem:[#allocation10_spill]] %s4155_s8 }
  0x14   :  { %4749 = sst [smem:[#allocation11_spill]] %s4160_s14 }
  0x15   :  { %s4180_s6 = sld [smem:[%s4726_s0 + %s4073_s1]]  }
  0x16   :  { %s4185_s12 = sld [smem:[%s4726_s0 + %s4074_s7]]   ;;  %s4078_s7 = smov 18  }
  0x17   :  { %s4190_s20 = sld [smem:[%s4726_s0 + %s4075_s15]]   ;;  %s4079_s15 = smov 19  }
  0x18   :  { %s4195_s27 = sld [smem:[%s4726_s0 + %s4076_s22]]   ;;  %s4080_s22 = smov 20  }
  0x19   :  { %s4200_s4 = sld [smem:[%s4726_s0 + %s4077_s28]]   ;;  %s4081_s28 = smov 21  }
  0x1b   :  { %4750 = sst [smem:[#allocation12_spill]] %s4180_s6 }
  0x1c   :  { %4751 = sst [smem:[#allocation13_spill]] %s4185_s12 }
  0x1d   :  { %4752 = sst [smem:[#allocation14_spill]] %s4190_s20 }
  0x1e   :  { %s4205_s6 = sld [smem:[%s4726_s0 + %s4078_s7]]   ;;  %s4082_s7 = smov 22  }
  0x1f   :  { %4753 = sst [smem:[#allocation15_spill]] %s4200_s4 }
  0x20   :  { %s4210_s20 = sld [smem:[%s4726_s0 + %s4079_s15]]   ;;  %s4083_s15 = smov 23  }
  0x21   :  { %s4215_s12 = sld [smem:[%s4726_s0 + %s4080_s22]]   ;;  %s4084_s22 = smov 24  }
  0x22   :  { %s4220_s4 = sld [smem:[%s4726_s0 + %s4081_s28]]   ;;  %s4085_s28 = smov 25  }
  0x24   :  { %4754 = sst [smem:[#allocation16_spill]] %s4205_s6 }
  0x25   :  { %s4225_s6 = sld [smem:[%s4726_s0 + %s4082_s7]]   ;;  %s4086_s7 = smov 26  }
  0x26   :  { %4755 = sst [smem:[#allocation17_spill]] %s4210_s20 }
  0x27   :  { %4756 = sst [smem:[#allocation18_spill]] %s4215_s12 }
  0x28   :  { %4757 = sst [smem:[#allocation19_spill]] %s4220_s4 }
  0x29   :  { %s4230_s20 = sld [smem:[%s4726_s0 + %s4083_s15]]   ;;  %s4087_s15 = smov 27  }
  0x2a   :  { %s4235_s12 = sld [smem:[%s4726_s0 + %s4084_s22]]   ;;  %s4088_s22 = smov 28  }
  0x2b   :  { %4758 = sst [smem:[#allocation20_spill]] %s4225_s6 }
  0x2c   :  { %s4240_s4 = sld [smem:[%s4726_s0 + %s4085_s28]]   ;;  %s4089_s28 = smov 29  }
  0x2d   :  { %s4245_s6 = sld [smem:[%s4726_s0 + %s4086_s7]]   ;;  %s4090_s7 = smov 30  }
  0x2f   :  { %4759 = sst [smem:[#allocation21_spill]] %s4230_s20 }
  0x30   :  { %4760 = sst [smem:[#allocation22_spill]] %s4235_s12 }
  0x31   :  { %s4250_s20 = sld [smem:[%s4726_s0 + %s4087_s15]]   ;;  %s4091_s15 = smov 31  }
  0x32   :  { %4761 = sst [smem:[#allocation23_spill]] %s4240_s4 }
  0x33   :  { %4762 = sst [smem:[#allocation24_spill]] %s4245_s6 }
  0x34   :  { %s4255_s12 = sld [smem:[%s4726_s0 + %s4088_s22]]   ;;  %s4092_s22 = smov 32  }
  0x35   :  { %s4260_s4 = sld [smem:[%s4726_s0 + %s4089_s28]]   ;;  %s4093_s28 = smov 33  }
  0x36   :  { %s4265_s6 = sld [smem:[%s4726_s0 + %s4090_s7]]   ;;  %s4094_s7 = smov 34  }
  0x37   :  { %4763 = sst [smem:[#allocation25_spill]] %s4250_s20 }
  0x38   :  { %s4270_s20 = sld [smem:[%s4726_s0 + %s4091_s15]]   ;;  %s4095_s15 = smov 35  }
  0x39   :  { %s4275_s13 = sld [smem:[%s4726_s0 + %s4092_s22]]   ;;  %s4096_s22 = smov 36  }
  0x3a   :  { %4764 = sst [smem:[#allocation26_spill]] %s4255_s12 }
  0x3b   :  { %4765 = sst [smem:[#allocation27_spill]] %s4260_s4 }
  0x3c   :  { %4766 = sst [smem:[#allocation28_spill]] %s4265_s6 }
  0x3d   :  { %s4280_s4 = sld [smem:[%s4726_s0 + %s4093_s28]]   ;;  %s4097_s28 = smov 37  }
  0x3e   :  { %4767 = sst [smem:[#allocation29_spill]] %s4270_s20 }
  0x3f   :  { %4768 = sst [smem:[#allocation30_spill]] %s4275_s13 }
  0x40   :  { %s4285_s17 = sld [smem:[%s4726_s0 + %s4094_s7]]   ;;  %s4098_s7 = smov 38  }
  0x41   :  { %s4290_s20 = sld [smem:[%s4726_s0 + %s4095_s15]]  }
  0x42   :  { %s4295_s13 = sld [smem:[%s4726_s0 + %s4096_s22]]  }
  0x43   :  { %4769 = sst [smem:[#allocation31_spill]] %s4280_s4 }
  0x44   :  { %s4300_s4 = sld [smem:[%s4726_s0 + %s4097_s28]]  }
  0x46   :  { %4770 = sst [smem:[#allocation32_spill]] %s4285_s17 }
  0x47   :  { %s4305_s17 = sld [smem:[%s4726_s0 + %s4098_s7]]  }
  0x4a   :  { %4771 = sst [smem:[#allocation33_spill]] %s4300_s4 }
  0x4b   :  { %82 = vsyncpa [#allocation3], 0 }
  0x4c   :  { %84 = vsyncpa [#allocation3 + $0x1], 0  ;;  %s4307_s15 = smov 0   ;;  %s4309_s16 = smov 0  }
  0x4d   :  { %s4311_s18 = smov 0   ;;  %s4313_s22 = smov 0  }
  0x4e LB: > { %s4772_s6 = sld [smem:[#allocation28_spill]]  ;;  %s4773_s12 = sld [smem:[#allocation26_spill]]  ;;  %s4055_s18 = sphi %s4311_s18, %s4805_s18   ;;  %s4051_s16 = sphi %s4309_s16, %s4804_s16   ;;  %s4047_s15 = sphi %s4307_s15, %s4803_s15   ;;  %s4059_s22 = sphi %s4313_s22, %s4806_s22  }
  0x4f   : > { %s4774_s8 = sld [smem:[#allocation10_spill]]  ;;  %s4328_s0 = sadd.s32 4294967295, %s4059_s22  }
  0x50   : > { %s3360_s23 = sadd.s32 4294967294, %s4059_s22   ;;  %s4332_s26 = sadd.s32 1, %s4059_s22  }
  0x51   : > { %s915_s28 = sadd.s32 1, %s4055_s18  ;;  %s912_s1 = ssub.s32 %s4059_s22, %s4332_s26 }
  0x52   : > { %p925_p0 = scmp.ne.s32.totalorder %s4055_s18, %s4051_s16  ;;  %p913_p1 = scmp.eq.s32.totalorder %s912_s1, 0 }
  0x53   : > { %p926_p2 = scmp.eq.s32.totalorder %s4328_s0, 1  ;;  %p931_p3 = scmp.ne.s32.totalorder %s4051_s16, %s4047_s15 }
  0x54   : > { %p932_p4 = scmp.eq.s32.totalorder %s3360_s23, 1  ;;  %p3363_p7 = scmp.ge.s32.totalorder %s4059_s22, 1 }
  0x55   : > { %s4343_s2 = scalar_select %p913_p1, %s4055_s18, %s915_s28  }
  0x56   : > { %p4345_p5 = por %p926_p2, %p925_p0  ;;  %p4349_p6 = por %p932_p4, %p931_p3 }
  0x57   : > { %p1078_p8 = scmp.lt.s32.totalorder %s4059_s22, 3 }
  0x59   : > { %p1079_p9 = pnand %p3363_p7, %p1078_p8 }
  0x5a   : > { %v1196_v0 = vld [vmem:[%s4135_s21] sm:$0xff] (!%p1079_p9)  ;;  %v1197_v1 = vld [vmem:[%s4135_s21 + $0x8] sm:$0xff] (!%p1079_p9)  ;;  %v4099_v3 = vmov (!%p1079_p9), 0.0|0.0   ;;  %v1198_v6 = vld [vmem:[%s4135_s21 + $0x10] sm:$0xff] (!%p1079_p9)  ;;  %p1180_p10 = scmp.lt.s32.totalorder (!%p1079_p9), %s4328_s0, 1  ;;  %s4777_s5 = sld [smem:[#allocation5_spill]] (!%p1079_p9)  ;;  %v1448_v32 = vlaneseq (!%p1079_p9) }
  0x5b   : > { %1082 = sbr.rel (%p1079_p9) target bundleno = 2639 (0xa4f), region = 172  ;;  %v1362_v2 = vld [vmem:[%s4774_s8] sm:$0xff] (!%p1079_p9)  ;;  %3698 = vmatprep.subr.bf16.mxu1 (!%p1079_p9), %v4099_v3  ;;  %3710 = vmatprep.subr.bf16.mxu0 (!%p1079_p9), %v4099_v3  ;;  %v3699_v4 = vpack.c.bf16 (!%p1079_p9), %v1197_v1, %v1196_v0  ;;  %v1363_v5 = vld [vmem:[%s4774_s8 + $0x8] sm:$0xff] (!%p1079_p9)  ;;  %v1199_v7 = vld [vmem:[%s4135_s21 + $0x18] sm:$0xff] (!%p1079_p9)  ;;  %vm4100_vm0 = vmmov (!%p1079_p9), 0   ;;  %v4101_v11 = vmov (!%p1079_p9), 0.0  }
  0x5c   : > { %v3711_v8 = vpack.c.bf16 (!%p1079_p9), %v1363_v5, %v1362_v2  ;;  %v1364_v9 = vld [vmem:[%s4774_s8 + $0x10] sm:$0xff] (!%p1079_p9)  ;;  %v1365_v10 = vld [vmem:[%s4774_s8 + $0x18] sm:$0xff] (!%p1079_p9)  ;;  %3503 = vmatprep.mubr.msk.f32.mxu1 (!%p1079_p9), %vm4100_vm0, %v4101_v11  ;;  %3525 = vmatprep.mubr.msk.f32.mxu0 (!%p1079_p9), %vm4100_vm0, %v4101_v11  ;;  %v3702_v12 = vpack.c.bf16 (!%p1079_p9), %v1199_v7, %v1198_v6  ;;  %v1281_v14 = vld [vmem:[%s4145_s29] sm:$0xff] (!%p1079_p9)  ;;  %vm1207_vm1 = vcmask (!%p1079_p9), 261120   ;;  %s4778_s14 = sld [smem:[#allocation11_spill]] (!%p1079_p9)  ;;  %s4779_s3 = sld [smem:[#allocation9_spill]] (!%p1079_p9) }
  0x5d   : > { %3700 = vmatpush3.bf16.msra.mxu1 (!%p1079_p9), %v3699_v4  ;;  %v3714_v13 = vpack.c.bf16 (!%p1079_p9), %v1365_v10, %v1364_v9  ;;  %v1282_v15 = vld [vmem:[%s4145_s29 + $0x8] sm:$0xff] (!%p1079_p9)  ;;  %v1283_v18 = vld [vmem:[%s4145_s29 + $0x10] sm:$0xff] (!%p1079_p9)  ;;  %v1284_v19 = vld [vmem:[%s4145_s29 + $0x18] sm:$0xff] (!%p1079_p9)  ;;  %v4102_v30 = vmov (!%p1079_p9), 1966171168   ;;  %v1449_v34 = vshrl.u32 (!%p1079_p9), %v1448_v32, 7 }
  0x5e   : > { %3712 = vmatpush3.bf16.msra.mxu0 (!%p1079_p9), %v3711_v8  ;;  %3701 = vmatprep.subr.bf16.mxu1 (!%p1079_p9), %v4099_v3  ;;  %v3705_v17 = vpack.c.bf16 (!%p1079_p9), %v1282_v15, %v1281_v14  ;;  %v3708_v20 = vpack.c.bf16 (!%p1079_p9), %v1284_v19, %v1283_v18  ;;  %v1701_v21 = vld [vmem:[%s4165_s19] sm:$0xff] (!%p1079_p9)  ;;  %v1702_v22 = vld [vmem:[%s4165_s19 + $0x8] sm:$0xff] (!%p1079_p9)  ;;  %v1703_v23 = vld [vmem:[%s4165_s19 + $0x10] sm:$0xff] (!%p1079_p9)  ;;  %v1446_v31 = vunpack.c.l.s4 (!%p1079_p9), %v4102_v30  ;;  %vm1720_vm2 = vcmask (!%p1079_p9), 1041409   ;;  %s4780_s9 = sld [smem:[#allocation6_spill]] (!%p1079_p9)  ;;  %s4781_s1 = sld [smem:[#allocation8_spill]] (!%p1079_p9) }
  0x5f   : > { %3713 = vmatprep.subr.bf16.mxu0 (!%p1079_p9), %v4099_v3  ;;  %v3717_v24 = vpack.c.bf16 (!%p1079_p9), %v1702_v22, %v1701_v21  ;;  %v1704_v25 = vld [vmem:[%s4165_s19 + $0x18] sm:$0xff] (!%p1079_p9)  ;;  %v1806_v27 = vld [vmem:[%s4773_s12] sm:$0xff] (!%p1079_p9)  ;;  %v1807_v28 = vld [vmem:[%s4773_s12 + $0x8] sm:$0xff] (!%p1079_p9)  ;;  %v4414_v44 = vsub.s32 (!%p1079_p9), 0, %v1449_v34  ;;  %vm1722_vm3 = vcmask (!%p1079_p9), 1042434   ;;  %vm1724_vm4 = vcmask (!%p1079_p9), 1043459  }
  0x60   : > { %v3720_v26 = vpack.c.bf16 (!%p1079_p9), %v1704_v25, %v1703_v23  ;;  %v3723_v29 = vpack.c.bf16 (!%p1079_p9), %v1807_v28, %v1806_v27  ;;  %v1447_v33 = vunpack.c.0.s8 (!%p1079_p9), %v1446_v31  ;;  %vm1726_vm5 = vcmask (!%p1079_p9), 1044484   ;;  %s4784_s8 = sld [smem:[#allocation13_spill]] (!%p1079_p9)  ;;  %s4802_s4 = sld [smem:[#allocation33_spill]] (!%p1079_p9) }
  0x61   : > { %3703 = vmatpush3.bf16.msra.mxu1 (!%p1079_p9), %v3702_v12  ;;  %vm1728_vm6 = vcmask (!%p1079_p9), 1045509   ;;  %vm1730_vm7 = vcmask (!%p1079_p9), 1046534   ;;  %vm1732_vm8 = vcmask (!%p1079_p9), 1047559   ;;  %vm3098_vm9 = vcmask (!%p1079_p9), 257024  }
  0x62   : > { %s4371_s11 = scalar_select %p1180_p10, %s4328_s0, 1  ;;  %3715 = vmatpush3.bf16.msra.mxu0 %v3714_v13  ;;  %3704 = vmatprep.subr.bf16.mxu1 %v4099_v3  ;;  %v3370_v35 = vld [vmem:[%s4778_s14] ss:$0 sm:$0xff]  ;;  %v4411_v37 = vsub.s32 %v1447_v33, %v1449_v34  ;;  %vm3133_vm10 = vcmask 523264   ;;  %vm3148_vm11 = vcmask 785408   ;;  %vm3222_vm12 = vcmask 16384  }
  0x63   : > { %3722 = vmatprep.subr.bf16.mxu0 %v4099_v3  ;;  %v3368_v48 = vld [vmem:[%s4779_s3] ss:$0 sm:$0xff] }
  0x64   : > { %s3364_s23 = sshll.u32 %s4371_s11, 3 }
  0x65   : > { %s1183_s28 = scalar_lea.vmem %s4777_s5, %s3364_s23  ;;  %s4782_s23 = sld [smem:[#allocation7_spill]] }
  0x66   : > { %v4379_v16 = vld [vmem:[%s1183_s28] sm:$0xff]  ;;  %s3365_s28 = sshll.u32 %s4371_s11, 2  ;;  %s4783_s5 = sld [smem:[#allocation27_spill]] }
  0x67   : > { %3504 = vmatmul.mubr.msk.f32.vlgmr.msra.gmra.mrb[0].mxu1 %vm1207_vm1, %v4379_v16  ;;  %3526 = vmatmul.mubr.msk.f32.vlgmr.msra.gmra.mrb[0].mxu0 %vm1207_vm1, %v4379_v16  ;;  %s1187_s3 = scalar_lea.vmem %s4780_s9, %s3365_s28  ;;  %s4792_s28 = sld [smem:[#allocation17_spill]] }
  0x68   : > { %3706 = vmatpush3.bf16.msra.mxu1 %v3705_v17  ;;  %3514 = vmatprep.mubr.msk.f32.mxu1 %vm4100_vm0, %v4101_v11 }
  0x69   : > { %3707 = vmatprep.subr.bf16.mxu1 %v4099_v3  ;;  %3547 = vmatprep.mubr.msk.f32.mxu0 %vm4100_vm0, %v4101_v11 }
  0x6a   : > { %3724 = vmatpush3.bf16.msra.mxu0 %v3723_v29 }
  0x6b   : > { %3725 = vmatprep.subr.bf16.mxu0 %v4099_v3  ;;  %s1190_s14 = scalar_lea.vmem %s4782_s23, %s4371_s11  ;;  %s4791_s23 = sld [smem:[#allocation18_spill]] }
  0x6c   : > { %3709 = vmatpush3.bf16.msra.mxu1 %v3708_v20 }
  0x6d   : > { %3716 = vmatprep.subr.bf16.mxu1 %v4099_v3 }
  0x6f   : > { %3515 = vmatmul.mubr.msk.f32.vlgmr.msra.gmra.mrb[2].mxu1 %vm1207_vm1, %v4379_v16 }
  0x70   : > { %3536 = vmatprep.mubr.msk.f32.mxu1 %vm4100_vm0, %v4101_v11  ;;  %3718 = vmatpush3.bf16.msra.mxu1 %v3717_v24 }
  0x71   : > { %3719 = vmatprep.subr.bf16.mxu1 %v4099_v3 }
  0x74   : > { %3721 = vmatpush3.bf16.msra.mxu1 %v3720_v26 }
  0x75   : > { %3728 = vmatprep.subr.bf16.mxu1 %v4099_v3 }
 0x13a   : > { %v4409_v36 = vpop.f32.mrb[0].mxu1  ;;  %v1439_v38 = vpop.f32.mrb[0].mxu0 }
 0x13b   : > { %v3505_v39 = vpop.f32.mrb[1].mxu1  ;;  %v1440_v40 = vadd.f32 %v3370_v35, %v1439_v38  ;;  %v3527_v41 = vpop.f32.mrb[1].mxu0 }
 0x13d   : > { %v1444_v42 = vcombine.high %v1440_v40, %v1440_v40  ;;  %v1451_v43 = vrot.slane %v1440_v40, %v4411_v37 }
 0x13f   : > { %v1458_v45 = vrot.slane %v1444_v42, %v4411_v37  ;;  %v1459_v46 = vcombine.high %v1451_v43, %v1451_v43  ;;  %v1467_v47 = vrot.slane %v1451_v43, %v4411_v37 }
 0x141   : > { %v1460_v49 = vcombine.high %v1458_v45, %v1458_v45  ;;  %v1474_v50 = vrot.slane %v1458_v45, %v4411_v37  ;;  %v1481_v51 = vrot.slane %v1459_v46, %v4411_v37  ;;  %v1489_v52 = vcombine.high %v1467_v47, %v1467_v47 }
 0x142   : > { %v1358_v53 = vpop.f32.mrb[2].mxu1  ;;  %v1496_v54 = vrot.slane %v1467_v47, %v4414_v44 }
 0x143   : > { %v1359_v55 = vadd.f32 %v3368_v48, %v1358_v53  ;;  %v3516_v56 = vpop.f32.mrb[3].mxu1  ;;  %v1488_v57 = vrot.slane %v1460_v49, %v4411_v37  ;;  %v1490_v58 = vcombine.high %v1474_v50, %v1474_v50  ;;  %v1491_v59 = vcombine.high %v1481_v51, %v1481_v51 }
 0x144   : > { %v1500_v60 = vrot.slane %v1481_v51, %v4414_v44  ;;  %v1504_v61 = vrot.slane %v1489_v52, %v4414_v44  ;;  %v1512_v62 = vrot.slane %v1474_v50, %v4414_v44 }
 0x145   : > { %v1533_v63 = vadd.f32 %v1496_v54, %v1359_v55  ;;  %v1492_v0 = vcombine.high %v1488_v57, %v1488_v57  ;;  %v1508_v1 = vrot.slane %v1491_v59, %v4414_v44  ;;  %v1516_v2 = vrot.slane %v1488_v57, %v4414_v44 }
 0x146   : > { %v1520_v4 = vrot.slane %v1490_v58, %v4414_v44  ;;  %v1534_v5 = vadd.f32 %v1500_v60, %v1359_v55  ;;  %v1535_v6 = vadd.f32 %v1504_v61, %v1359_v55  ;;  %v1537_v7 = vadd.f32 %v1512_v62, %v1359_v55 }
 0x147   : > { %3897 = vtanh.f32 %v1533_v63  ;;  %v1524_v8 = vrot.slane %v1492_v0, %v4414_v44  ;;  %v1536_v9 = vadd.f32 %v1508_v1, %v1359_v55  ;;  %v1538_v10 = vadd.f32 %v1516_v2, %v1359_v55 }
 0x148   : > { %v1539_v12 = vadd.f32 %v1520_v4, %v1359_v55  ;;  %3899 = vtanh.f32 %v1534_v5 }
 0x149   : > { %v1540_v13 = vadd.f32 %v1524_v8, %v1359_v55  ;;  %3901 = vtanh.f32 %v1535_v6 }
 0x14a   : > { %3903 = vtanh.f32 %v1536_v9 }
 0x14b   : > { %3905 = vtanh.f32 %v1537_v7 }
 0x14c   : > { %3907 = vtanh.f32 %v1538_v10 }
 0x14d   : > { %3909 = vtanh.f32 %v1539_v12 }
 0x14e   : > { %3911 = vtanh.f32 %v1540_v13 }
 0x151   : > { %v3898_v14 = vpop.eup %3897 }
 0x152   : > { %v1549_v15 = vmul.f32 1.442695, %v3898_v14  ;;  %v3900_v17 = vpop.eup %3899 }
 0x153   : > { %v3902_v18 = vpop.eup %3901  ;;  %v1551_v19 = vmul.f32 1.442695, %v3900_v17 }
 0x154   : > { %3913 = vpow2.f32 %v1549_v15  ;;  %v3904_v20 = vpop.eup %3903  ;;  %v1553_v21 = vmul.f32 1.442695, %v3902_v18 }
 0x155   : > { %v3906_v22 = vpop.eup %3905  ;;  %3915 = vpow2.f32 %v1551_v19  ;;  %v1555_v23 = vmul.f32 1.442695, %v3904_v20 }
 0x156   : > { %v3908_v24 = vpop.eup %3907  ;;  %3917 = vpow2.f32 %v1553_v21  ;;  %v1557_v25 = vmul.f32 1.442695, %v3906_v22 }
 0x157   : > { %v3910_v26 = vpop.eup %3909  ;;  %3919 = vpow2.f32 %v1555_v23  ;;  %v1559_v27 = vmul.f32 1.442695, %v3908_v24 }
 0x158   : > { %v3912_v28 = vpop.eup %3911  ;;  %3921 = vpow2.f32 %v1557_v25  ;;  %v1561_v29 = vmul.f32 1.442695, %v3910_v26 }
 0x159   : > { %3923 = vpow2.f32 %v1559_v27  ;;  %v1563_v30 = vmul.f32 1.442695, %v3912_v28 }
 0x15a   : > { %3925 = vpow2.f32 %v1561_v29 }
 0x15b   : > { %3927 = vpow2.f32 %v1563_v30 }
 0x15e   : > { %v4430_v31 = vpop.eup %3913 }
 0x15f   : > { %v1565_v32 = vsel %vm1207_vm1, %v4430_v31, 0.0  ;;  %v4434_v33 = vpop.eup %3915 }
 0x160   : > { %v1566_v34 = vrot.slane %v1565_v32, 4  ;;  %v4436_v35 = vpop.eup %3917  ;;  %v1572_v38 = vsel %vm1207_vm1, %v4434_v33, 0.0 }
 0x161   : > { %v4440_v39 = vpop.eup %3919  ;;  %v1573_v40 = vrot.slane %v1572_v38, 4  ;;  %v1579_v42 = vsel %vm1207_vm1, %v4436_v35, 0.0 }
 0x162   : > { %v1567_v41 = vadd.f32 %v1566_v34, %v1565_v32  ;;  %v4444_v43 = vpop.eup %3921  ;;  %v1580_v45 = vrot.slane %v1579_v42, 4  ;;  %v1586_v46 = vsel %vm1207_vm1, %v4440_v39, 0.0 }
 0x163   : > { %v4448_v47 = vpop.eup %3923  ;;  %v1574_v49 = vadd.f32 %v1573_v40, %v1572_v38  ;;  %v1587_v50 = vrot.slane %v1586_v46, 4  ;;  %v1593_v51 = vsel %vm1207_vm1, %v4444_v43, 0.0 }
 0x164   : > { %v1568_v48 = vrot.slane %v1567_v41, 2  ;;  %v4452_v52 = vpop.eup %3925  ;;  %v1581_v53 = vadd.f32 %v1580_v45, %v1579_v42  ;;  %v1594_v54 = vrot.slane %v1593_v51, 4  ;;  %v1600_v55 = vsel %vm1207_vm1, %v4448_v47, 0.0  ;;  %v3366_v45 = vld [vmem:[%s4140_s25] ss:$0 sm:$0xff] }
 0x165   : > { %v4456_v56 = vpop.eup %3927  ;;  %v1575_v58 = vrot.slane %v1574_v49, 2  ;;  %v1588_v59 = vadd.f32 %v1587_v50, %v1586_v46  ;;  %v1601_v60 = vrot.slane %v1600_v55, 4  ;;  %v1607_v63 = vsel %vm1207_vm1, %v4452_v52, 0.0 }
 0x166   : > { %v1569_v57 = vadd.f32 %v1568_v48, %v1567_v41  ;;  %v1582_v61 = vrot.slane %v1581_v53, 2  ;;  %v1595_v62 = vadd.f32 %v1594_v54, %v1593_v51  ;;  %v1614_v0 = vsel %vm1207_vm1, %v4456_v56, 0.0 }
 0x167   : > { %v1576_v2 = vadd.f32 %v1575_v58, %v1574_v49  ;;  %v1589_v4 = vrot.slane %v1588_v59, 2  ;;  %v1602_v5 = vadd.f32 %v1601_v60, %v1600_v55  ;;  %v1608_v8 = vrot.slane %v1607_v63, 4 }
 0x168   : > { %v1570_v1 = vrot.slane %v1569_v57, 1  ;;  %v1583_v6 = vadd.f32 %v1582_v61, %v1581_v53  ;;  %v1596_v7 = vrot.slane %v1595_v62, 2  ;;  %v1615_v9 = vrot.slane %v1614_v0, 4 }
 0x169   : > { %v1577_v12 = vrot.slane %v1576_v2, 1  ;;  %v1590_v13 = vadd.f32 %v1589_v4, %v1588_v59  ;;  %v1603_v14 = vrot.slane %v1602_v5, 2  ;;  %v1609_v18 = vadd.f32 %v1608_v8, %v1607_v63 }
 0x16a   : > { %v1571_v10 = vadd.f32 %v1570_v1, %v1569_v57  ;;  %v1584_v15 = vrot.slane %v1583_v6, 1  ;;  %v1597_v17 = vadd.f32 %v1596_v7, %v1595_v62  ;;  %v1616_v19 = vadd.f32 %v1615_v9, %v1614_v0 }
 0x16b   : > { %v1578_v20 = vadd.f32 %v1577_v12, %v1576_v2  ;;  %v1591_v21 = vrot.slane %v1590_v13, 1  ;;  %v1604_v22 = vadd.f32 %v1603_v14, %v1602_v5  ;;  %v1610_v25 = vrot.slane %v1609_v18, 2 }
 0x16c   : > { %3929 = vrcp.f32 %v1571_v10  ;;  %v1585_v23 = vadd.f32 %v1584_v15, %v1583_v6  ;;  %v1598_v24 = vrot.slane %v1597_v17, 1  ;;  %v1617_v26 = vrot.slane %v1616_v19, 2 }
 0x16d   : > { %v1592_v27 = vadd.f32 %v1591_v21, %v1590_v13  ;;  %v1605_v28 = vrot.slane %v1604_v22, 1  ;;  %3931 = vrcp.f32 %v1578_v20  ;;  %v1611_v30 = vadd.f32 %v1610_v25, %v1609_v18 }
 0x16e   : > { %v1599_v29 = vadd.f32 %v1598_v24, %v1597_v17  ;;  %v1618_v32 = vadd.f32 %v1617_v26, %v1616_v19  ;;  %3933 = vrcp.f32 %v1585_v23  ;;  %v1278_v48 = vadd.f32 %v3366_v45, %v4409_v36 }
 0x16f   : > { %v1606_v34 = vadd.f32 %v1605_v28, %v1604_v22  ;;  %3935 = vrcp.f32 %v1592_v27  ;;  %v1612_v38 = vrot.slane %v1611_v30, 1 }
 0x170   : > { %v1619_v40 = vrot.slane %v1618_v32, 1  ;;  %3937 = vrcp.f32 %v1599_v29 }
 0x171   : > { %3939 = vrcp.f32 %v1606_v34  ;;  %v1613_v41 = vadd.f32 %v1612_v38, %v1611_v30 }
 0x172   : > { %v1620_v42 = vadd.f32 %v1619_v40, %v1618_v32 }
 0x173   : > { %3941 = vrcp.f32 %v1613_v41 }
 0x174   : > { %3943 = vrcp.f32 %v1620_v42 }
 0x176   : > { %v3930_v46 = vpop.eup %3929 }
 0x177   : > { %v1629_v49 = vmul.f32 %v3930_v46, %v4430_v31  ;;  %v3932_v50 = vpop.eup %3931 }
 0x178   : > { %v3934_v51 = vpop.eup %3933  ;;  %v1630_v53 = vmul.f32 %v3932_v50, %v4434_v33 }
 0x179   : > { %v1637_v54 = vmul.f32 %v1629_v49, %v1278_v48  ;;  %v3936_v55 = vpop.eup %3935  ;;  %v1631_v57 = vmul.f32 %v3934_v51, %v4436_v35 }
 0x17a   : > { %v3938_v58 = vpop.eup %3937  ;;  %v1632_v59 = vmul.f32 %v3936_v55, %v4440_v39  ;;  %v1638_v60 = vmul.f32 %v1630_v53, %v1278_v48 }
 0x17b   : > { %v1645_v61 = vsel %vm1207_vm1, %v1637_v54, 0.0  ;;  %v3940_v62 = vpop.eup %3939  ;;  %v1633_v63 = vmul.f32 %v3938_v58, %v4444_v43  ;;  %v1639_v36 = vmul.f32 %v1631_v57, %v1278_v48 }
 0x17c   : > { %v1646_v0 = vrot.slane %v1645_v61, 4  ;;  %v1634_v31 = vmul.f32 %v3940_v62, %v4448_v47  ;;  %v1640_v1 = vmul.f32 %v1632_v59, %v1278_v48  ;;  %v1652_v33 = vsel %vm1207_vm1, %v1638_v60, 0.0 }
 0x17d   : > { %v1641_v2 = vmul.f32 %v1633_v63, %v1278_v48  ;;  %v1653_v5 = vrot.slane %v1652_v33, 4  ;;  %v1659_v35 = vsel %vm1207_vm1, %v1639_v36, 0.0  ;;  %v3942_v6 = vpop.eup %3941 }
 0x17e   : > { %v1647_v4 = vadd.f32 %v1646_v0, %v1645_v61  ;;  %v1642_v39 = vmul.f32 %v1634_v31, %v1278_v48  ;;  %v1660_v7 = vrot.slane %v1659_v35, 4  ;;  %v1666_v8 = vsel %vm1207_vm1, %v1640_v1, 0.0  ;;  %v3944_v9 = vpop.eup %3943 }
 0x17f   : > { %v1635_v43 = vmul.f32 %v3942_v6, %v4452_v52  ;;  %v1654_v12 = vadd.f32 %v1653_v5, %v1652_v33  ;;  %v1667_v47 = vrot.slane %v1666_v8, 4  ;;  %v1636_v13 = vmul.f32 %v3944_v9, %v4456_v56 }
 0x180   : > { %v1648_v10 = vrot.slane %v1647_v4, 2  ;;  %v1661_v14 = vadd.f32 %v1660_v7, %v1659_v35  ;;  %v1673_v15 = vsel %vm1207_vm1, %v1641_v2, 0.0  ;;  %v1680_v17 = vsel %vm1207_vm1, %v1642_v39, 0.0 }
 0x181   : > { %v1643_v18 = vmul.f32 %v1635_v43, %v1278_v48  ;;  %v1655_v20 = vrot.slane %v1654_v12, 2  ;;  %v1668_v21 = vadd.f32 %v1667_v47, %v1666_v8  ;;  %v1644_v22 = vmul.f32 %v1636_v13, %v1278_v48  ;;  %v1808_v43 = vld [vmem:[%s4773_s12 + $0x10] sm:$0xff]  ;;  %v1891_v47 = vld [vmem:[%s4772_s6] sm:$0xff]  ;;  %v1892_v13 = vld [vmem:[%s4772_s6 + $0x8] sm:$0xff] }
 0x182   : > { %v1649_v19 = vadd.f32 %v1648_v10, %v1647_v4  ;;  %v1662_v23 = vrot.slane %v1661_v14, 2  ;;  %v1674_v24 = vrot.slane %v1673_v15, 4  ;;  %v1681_v25 = vrot.slane %v1680_v17, 4  ;;  %v1809_v10 = vld [vmem:[%s4773_s12 + $0x18] sm:$0xff]  ;;  %s1193_s12 = scalar_lea.vmem %s4781_s1, %s4371_s11  ;;  %s4789_s11 = sld [smem:[#allocation12_spill]] }
 0x183   : > { %v1656_v26 = vadd.f32 %v1655_v20, %v1654_v12  ;;  %v1669_v27 = vrot.slane %v1668_v21, 2  ;;  %v1687_v28 = vsel %vm1207_vm1, %v1643_v18, 0.0  ;;  %v1694_v41 = vsel %vm1207_vm1, %v1644_v22, 0.0  ;;  %v3372_v18 = vld [vmem:[%s4170_s24] ss:$0 sm:$0xff]  ;;  %s4790_s1 = sld [smem:[#allocation32_spill]] }
 0x184   : > { %v1650_v52 = vrot.slane %v1649_v19, 1  ;;  %v1663_v29 = vadd.f32 %v1662_v23, %v1661_v14  ;;  %v1675_v56 = vadd.f32 %v1674_v24, %v1673_v15  ;;  %v1682_v30 = vadd.f32 %v1681_v25, %v1680_v17  ;;  %v1975_v15 = vld [vmem:[%s4175_s30] sm:$0xff]  ;;  %v1976_v17 = vld [vmem:[%s4175_s30 + $0x8] sm:$0xff]  ;;  %v1977_v23 = vld [vmem:[%s4175_s30 + $0x10] sm:$0xff] }
 0x185   : > { %v1688_v32 = vrot.slane %v1687_v28, 4  ;;  %v1657_v38 = vrot.slane %v1656_v26, 1  ;;  %v1670_v40 = vadd.f32 %v1669_v27, %v1668_v21  ;;  %v1695_v51 = vrot.slane %v1694_v41, 4  ;;  %v1978_v24 = vld [vmem:[%s4175_s30 + $0x18] sm:$0xff] }
 0x186   : > { %v1651_v34 = vadd.f32 %v1650_v52, %v1649_v19  ;;  %v1664_v42 = vrot.slane %v1663_v29, 1  ;;  %v1676_v45 = vrot.slane %v1675_v56, 2  ;;  %v1683_v46 = vrot.slane %v1682_v30, 2  ;;  %v2137_v52 = vld [vmem:[%s4195_s27] sm:$0xff] }
 0x187   : > { %v1689_v48 = vadd.f32 %v1688_v32, %v1687_v28  ;;  %v1658_v49 = vadd.f32 %v1657_v38, %v1656_v26  ;;  %v1671_v50 = vrot.slane %v1670_v40, 1  ;;  %v1696_v59 = vadd.f32 %v1695_v51, %v1694_v41  ;;  %v2138_v26 = vld [vmem:[%s4195_s27 + $0x8] sm:$0xff]  ;;  %v2139_v28 = vld [vmem:[%s4195_s27 + $0x10] sm:$0xff]  ;;  %v1894_v32 = vld [vmem:[%s4772_s6 + $0x18] sm:$0xff] }
 0x188   : > { %v1665_v53 = vadd.f32 %v1664_v42, %v1663_v29  ;;  %v1677_v54 = vadd.f32 %v1676_v45, %v1675_v56  ;;  %v1684_v55 = vadd.f32 %v1683_v46, %v1682_v30  ;;  %v3726_v12 = vpack.c.bf16 %v1809_v10, %v1808_v43  ;;  %v2140_v29 = vld [vmem:[%s4195_s27 + $0x18] sm:$0xff]  ;;  %v1893_v30 = vld [vmem:[%s4772_s6 + $0x10] sm:$0xff]  ;;  %v1195_v38 = vld [vmem:[%s1187_s3] sm:$0xf]  ;;  %s4785_s3 = sld [smem:[#allocation16_spill]] }
 0x189   : > { %v1690_v57 = vrot.slane %v1689_v48, 2  ;;  %v1672_v58 = vadd.f32 %v1671_v50, %v1670_v40  ;;  %v1721_v60 = vsel %vm1720_vm2, %v1658_v49, %v1651_v34  ;;  %v1697_v0 = vrot.slane %v1696_v59, 2  ;;  %v3079_v40 = vld [vmem:[%s1193_s12] sm:$0x1]  ;;  %v2057_v50 = vld [vmem:[%s4784_s8 + $0x8] sm:$0xff]  ;;  %s4788_s12 = sld [smem:[#allocation14_spill]] }
 0x18a   : > { %v1678_v61 = vrot.slane %v1677_v54, 1  ;;  %v1685_v62 = vrot.slane %v1684_v55, 1  ;;  %v1723_v36 = vsel %vm1722_vm3, %v1665_v53, %v1721_v60  ;;  %3727 = vmatpush3.bf16.msra.mxu0 %v3726_v12  ;;  %v3729_v14 = vpack.c.bf16 %v1892_v13, %v1891_v47  ;;  %v3077_v42 = vld [vmem:[%s1190_s14] sm:$0x1]  ;;  %s4787_s14 = sld [smem:[#allocation15_spill]] }
 0x18b   : > { %v1691_v63 = vadd.f32 %v1690_v57, %v1689_v48  ;;  %v1725_v31 = vsel %vm1724_vm4, %v1672_v58, %v1723_v36  ;;  %v1698_v4 = vadd.f32 %v1697_v0, %v1696_v59  ;;  %3734 = vmatprep.subr.bf16.mxu0 %v4099_v3  ;;  %v3735_v20 = vpack.c.bf16 %v1976_v17, %v1975_v15  ;;  %v3374_v48 = vld [vmem:[%s4783_s5] ss:$0 sm:$0xff]  ;;  %v2058_v58 = vld [vmem:[%s4784_s8 + $0x10] sm:$0xff]  ;;  %v2059_v59 = vld [vmem:[%s4784_s8 + $0x18] sm:$0xff]  ;;  %s4786_s5 = sld [smem:[#allocation30_spill]] }
 0x18c   : > { %v1679_v1 = vadd.f32 %v1678_v61, %v1677_v54  ;;  %v1686_v2 = vadd.f32 %v1685_v62, %v1684_v55  ;;  %v3738_v25 = vpack.c.bf16 %v1978_v24, %v1977_v23  ;;  %v3747_v27 = vpack.c.bf16 %v2138_v26, %v2137_v52  ;;  %v2056_v49 = vld [vmem:[%s4784_s8] sm:$0xff] }
 0x18d   : > { %v1692_v33 = vrot.slane %v1691_v63, 1  ;;  %v1699_v6 = vrot.slane %v1698_v4, 1  ;;  %v3750_v56 = vpack.c.bf16 %v2140_v29, %v2139_v28  ;;  %v3732_v34 = vpack.c.bf16 %v1894_v32, %v1893_v30 }
 0x18e   : > { %v1727_v35 = vsel %vm1726_vm5, %v1679_v1, %v1725_v31  ;;  %v4103_v41 = vmov 0   ;;  %3945 = vrcp.f32 %v3077_v42  ;;  %v3741_v55 = vpack.c.bf16 %v2057_v50, %v2056_v49  ;;  %v2350_v0 = vld [vmem:[%s4785_s3] sm:$0xff]  ;;  %v2351_v31 = vld [vmem:[%s4785_s3 + $0x8] sm:$0xff]  ;;  %v2352_v1 = vld [vmem:[%s4785_s3 + $0x10] sm:$0xff] }
 0x18f   : > { %v1693_v5 = vadd.f32 %v1692_v33, %v1691_v63  ;;  %v1729_v39 = vsel %vm1728_vm6, %v1686_v2, %v1727_v35  ;;  %v1700_v8 = vadd.f32 %v1699_v6, %v1698_v4  ;;  %3896 = vset.pattern.permute.xlu0 %v4103_v41  ;;  %3947 = vrcp.f32 %v3079_v40  ;;  %v2353_v2 = vld [vmem:[%s4785_s3 + $0x18] sm:$0xff] }
 0x190   : > { %v3744_v60 = vpack.c.bf16 %v2059_v59, %v2058_v58  ;;  %v3753_v33 = vpack.c.bf16 %v2351_v31, %v2350_v0  ;;  %v3756_v4 = vpack.c.bf16 %v2353_v2, %v2352_v1 }
 0x191   : > { %v1731_v7 = vsel %vm1730_vm7, %v1693_v5, %v1729_v39  ;;  %v2441_v5 = vld [vmem:[%s4786_s5 + $0x8] sm:$0xff]  ;;  %v2442_v35 = vld [vmem:[%s4786_s5 + $0x10] sm:$0xff]  ;;  %v2443_v39 = vld [vmem:[%s4786_s5 + $0x18] sm:$0xff] }
 0x192   : > { %v1733_v9 = vsel %vm1732_vm8, %v1700_v8, %v1731_v7  ;;  %v3762_v7 = vpack.c.bf16 %v2443_v39, %v2442_v35  ;;  %v3382_v8 = vld [vmem:[%s4787_s14] ss:$0 sm:$0xff]  ;;  %s4793_s14 = sld [smem:[#allocation29_spill]] }
 0x193   : > { %3537 = vmatmul.mubr.msk.f32.vlgmr.msra.gmra.mrb[4].mxu1 %vm1207_vm1, %v1733_v9 }
 0x194   : > { %3558 = vmatprep.mubr.msk.f32.mxu1 %vm4100_vm0, %v4101_v11  ;;  %3730 = vmatpush3.bf16.msra.mxu1 %v3729_v14 }
 0x195   : > { %3731 = vmatprep.subr.bf16.mxu1 %v4099_v3 }
 0x198   : > { %3733 = vmatpush3.bf16.msra.mxu1 %v3732_v34  ;;  %v3946_v45 = vpop.eup %3945 }
 0x199   : > { %3740 = vmatprep.subr.bf16.mxu1 %v4099_v3  ;;  %3090 = vperm.xlu0 %3896, %v3946_v45   ;;  %v3948_v46 = vpop.eup %3947 }
 0x19d   : > { %3108 = vperm.xlu0 %3896, %v3948_v46  }
 0x266   : > { %v1802_v19 = vpop.f32.mrb[4].mxu1 }
 0x267   : > { %v1803_v21 = vadd.f32 %v3372_v18, %v1802_v19  ;;  %v3538_v22 = vpop.f32.mrb[5].mxu1  ;;  %v3380_v18 = vld [vmem:[%s4788_s12] ss:$0 sm:$0xff]  ;;  %s4794_s12 = sld [smem:[#allocation22_spill]] }
 0x269   : > { %3548 = vmatmul.mubr.msk.f32.vlgmr.msra.gmra.mrb[2].mxu0 %vm1207_vm1, %v1803_v21 }
 0x26a   : > { %3736 = vmatpush3.bf16.msra.mxu0 %v3735_v20  ;;  %3569 = vmatprep.mubr.msk.f32.mxu0 %vm4100_vm0, %v4101_v11 }
 0x26b   : > { %3737 = vmatprep.subr.bf16.mxu0 %v4099_v3 }
 0x26e   : > { %3739 = vmatpush3.bf16.msra.mxu0 %v3738_v25 }
 0x26f   : > { %3746 = vmatprep.subr.bf16.mxu0 %v4099_v3 }
 0x271   : > { %3570 = vmatmul.mubr.msk.f32.vlgmr.msra.gmra.mrb[4].mxu0 %vm1207_vm1, %v4379_v16 }
 0x272   : > { %3748 = vmatpush3.bf16.msra.mxu0 %v3747_v27  ;;  %3591 = vmatprep.mubr.msk.f32.mxu0 %vm4100_vm0, %v4101_v11 }
 0x273   : > { %3749 = vmatprep.subr.bf16.mxu0 %v4099_v3 }
 0x276   : > { %3751 = vmatpush3.bf16.msra.mxu0 %v3750_v56 }
 0x277   : > { %3758 = vmatprep.subr.bf16.mxu0 %v4099_v3 }
 0x279   : > { %3592 = vmatmul.mubr.msk.f32.vlgmr.msra.gmra.mrb[6].mxu0 %vm1207_vm1, %v1195_v38 }
 0x27a   : > { %3613 = vmatprep.mubr.msk.f32.mxu0 %vm4100_vm0, %v4101_v11 }
 0x33c   : > { %v1886_v51 = vpop.f32.mrb[2].mxu0 }
 0x33d   : > { %v1887_v53 = vadd.f32 %v3374_v48, %v1886_v51  ;;  %v3549_v54 = vpop.f32.mrb[3].mxu0 }
 0x33f   : > { %v1890_v57 = vmax.f32 %v1887_v53, 0.0 }
 0x341   : > { %3559 = vmatmul.mubr.msk.f32.vlgmr.msra.gmra.mrb[6].mxu1 %vm1207_vm1, %v1890_v57 }
 0x342   : > { %3742 = vmatpush3.bf16.msra.mxu1 %v3741_v55  ;;  %3580 = vmatprep.mubr.msk.f32.mxu1 %vm4100_vm0, %v4101_v11 }
 0x343   : > { %3743 = vmatprep.subr.bf16.mxu1 %v4099_v3 }
 0x344   : > { %v4533_v61 = vpop.f32.mrb[4].mxu0 }
 0x345   : > { %v3571_v62 = vpop.f32.mrb[5].mxu0 }
 0x346   : > { %3745 = vmatpush3.bf16.msra.mxu1 %v3744_v60 }
 0x347   : > { %3752 = vmatprep.subr.bf16.mxu1 %v4099_v3 }
 0x349   : > { %3581 = vmatmul.mubr.msk.f32.vlgmr.msra.gmra.mrb[8].mxu1 %vm1207_vm1, %v4379_v16  ;;  %v2440_v16 = vld [vmem:[%s4786_s5] sm:$0xff] }
 0x34a   : > { %3602 = vmatprep.mubr.msk.f32.mxu1 %vm4100_vm0, %v4101_v11  ;;  %3754 = vmatpush3.bf16.msra.mxu1 %v3753_v33  ;;  %v3759_v6 = vpack.c.bf16 %v2441_v5, %v2440_v16 }
 0x34b   : > { %3755 = vmatprep.subr.bf16.mxu1 %v4099_v3 }
 0x34c   : > { %v2217_v63 = vpop.f32.mrb[6].mxu0  ;;  %3760 = vmatpush3.bf16.msra.mxu0 %v3759_v6 }
 0x34d   : > { %v3593_v36 = vpop.f32.mrb[7].mxu0  ;;  %3761 = vmatprep.subr.bf16.mxu0 %v4099_v3  ;;  %v2218_v9 = vadd.f32 %v3382_v8, %v2217_v63 }
 0x34e   : > { %3757 = vmatpush3.bf16.msra.mxu1 %v3756_v4 }
 0x34f   : > { %3764 = vmatprep.subr.bf16.mxu1 %v4099_v3  ;;  %v2228_v43 = vrot.slane %v2218_v9, %v4411_v37 }
 0x350   : > { %3763 = vmatpush3.bf16.msra.mxu0 %v3762_v7 }
 0x351   : > { %3770 = vmatprep.subr.bf16.mxu0 %v4099_v3  ;;  %v2229_v10 = vcombine.high %v2228_v43, %v2228_v43  ;;  %v2236_v12 = vrot.slane %v2228_v43, %v4411_v37 }
 0x353   : > { %v2243_v47 = vrot.slane %v2229_v10, %v4411_v37  ;;  %v2244_v15 = vcombine.high %v2236_v12, %v2236_v12  ;;  %v2249_v23 = vrot.slane %v2236_v12, %v4414_v44  ;;  %v3378_v10 = vld [vmem:[%s4789_s11] ss:$0 sm:$0xff]  ;;  %s4795_s11 = sld [smem:[#allocation31_spill]] }
 0x355   : > { %v2245_v17 = vcombine.high %v2243_v47, %v2243_v47  ;;  %v2253_v19 = vrot.slane %v2243_v47, %v4414_v44  ;;  %v2257_v20 = vrot.slane %v2244_v15, %v4414_v44 }
 0x357   : > { %v2261_v21 = vrot.slane %v2245_v17, %v4414_v44 }
 0x414   : > { %v4556_v13 = vpop.f32.mrb[6].mxu1 }
 0x415   : > { %v3560_v14 = vpop.f32.mrb[7].mxu1 }
 0x416   : > { %v2053_v14 = vadd.f32 %v3378_v10, %v4533_v61 }
 0x41c   : > { %v2133_v22 = vpop.f32.mrb[8].mxu1 }
 0x41d   : > { %v2134_v24 = vadd.f32 %v3380_v18, %v2133_v22  ;;  %v3582_v25 = vpop.f32.mrb[9].mxu1 }
 0x41f   : > { %v2266_v52 = vadd.f32 %v2249_v23, %v2134_v24  ;;  %v2267_v26 = vadd.f32 %v2253_v19, %v2134_v24  ;;  %v2268_v27 = vadd.f32 %v2257_v20, %v2134_v24  ;;  %v2269_v28 = vadd.f32 %v2261_v21, %v2134_v24 }
 0x421   : > { %3949 = vtanh.f32 %v2266_v52 }
 0x422   : > { %3951 = vtanh.f32 %v2267_v26 }
 0x423   : > { %3953 = vtanh.f32 %v2268_v27 }
 0x424   : > { %3955 = vtanh.f32 %v2269_v28 }
 0x42b   : > { %v3950_v29 = vpop.eup %3949 }
 0x42c   : > { %v3952_v56 = vpop.eup %3951  ;;  %v2274_v30 = vmul.f32 1.442695, %v3950_v29 }
 0x42d   : > { %v3954_v32 = vpop.eup %3953  ;;  %v2276_v34 = vmul.f32 1.442695, %v3952_v56 }
 0x42e   : > { %v3956_v38 = vpop.eup %3955  ;;  %3957 = vpow2.f32 %v2274_v30  ;;  %v2278_v40 = vmul.f32 1.442695, %v3954_v32 }
 0x42f   : > { %3959 = vpow2.f32 %v2276_v34  ;;  %v2280_v41 = vmul.f32 1.442695, %v3956_v38 }
 0x430   : > { %3961 = vpow2.f32 %v2278_v40 }
 0x431   : > { %3963 = vpow2.f32 %v2280_v41 }
 0x438   : > { %v3958_v42 = vpop.eup %3957 }
 0x439   : > { %v3960_v45 = vpop.eup %3959  ;;  %v2282_v46 = vsel %vm1207_vm1, %v3958_v42, 0.0 }
 0x43a   : > { %v3962_v48 = vpop.eup %3961  ;;  %v2283_v49 = vrot.slane %v2282_v46, 4  ;;  %v2289_v50 = vsel %vm1207_vm1, %v3960_v45, 0.0 }
 0x43b   : > { %v3964_v51 = vpop.eup %3963  ;;  %v2290_v53 = vrot.slane %v2289_v50, 4  ;;  %v2296_v54 = vsel %vm1207_vm1, %v3962_v48, 0.0 }
 0x43c   : > { %v2284_v55 = vadd.f32 %v2283_v49, %v2282_v46  ;;  %v2297_v57 = vrot.slane %v2296_v54, 4  ;;  %v2303_v58 = vsel %vm1207_vm1, %v3964_v51, 0.0 }
 0x43d   : > { %v2291_v59 = vadd.f32 %v2290_v53, %v2289_v50  ;;  %v2304_v60 = vrot.slane %v2303_v58, 4 }
 0x43e   : > { %v2285_v62 = vrot.slane %v2284_v55, 2  ;;  %v2298_v63 = vadd.f32 %v2297_v57, %v2296_v54 }
 0x43f   : > { %v2292_v36 = vrot.slane %v2291_v59, 2  ;;  %v2305_v0 = vadd.f32 %v2304_v60, %v2303_v58 }
 0x440   : > { %v2286_v31 = vadd.f32 %v2285_v62, %v2284_v55  ;;  %v2299_v1 = vrot.slane %v2298_v63, 2 }
 0x441   : > { %v2293_v33 = vadd.f32 %v2292_v36, %v2291_v59  ;;  %v2306_v2 = vrot.slane %v2305_v0, 2 }
 0x442   : > { %v2287_v4 = vrot.slane %v2286_v31, 1  ;;  %v2300_v16 = vadd.f32 %v2299_v1, %v2298_v63  ;;  %v2526_v1 = vld [vmem:[%s4790_s1 + $0x8] sm:$0xff] }
 0x443   : > { %v2294_v5 = vrot.slane %v2293_v33, 1  ;;  %v2307_v35 = vadd.f32 %v2306_v2, %v2305_v0  ;;  %v2609_v2 = vld [vmem:[%s4791_s23] sm:$0xff] }
 0x444   : > { %v2288_v6 = vadd.f32 %v2287_v4, %v2286_v31  ;;  %v2301_v39 = vrot.slane %v2300_v16, 1  ;;  %v2525_v31 = vld [vmem:[%s4790_s1] sm:$0xff]  ;;  %v2610_v4 = vld [vmem:[%s4791_s23 + $0x8] sm:$0xff] }
 0x445   : > { %v2295_v7 = vadd.f32 %v2294_v5, %v2293_v33  ;;  %v2308_v8 = vrot.slane %v2307_v35, 1  ;;  %v3765_v33 = vpack.c.bf16 %v2526_v1, %v2525_v31 }
 0x446   : > { %v2302_v9 = vadd.f32 %v2301_v39, %v2300_v16  ;;  %3965 = vrcp.f32 %v2288_v6  ;;  %v3384_v16 = vld [vmem:[%s4792_s28] ss:$0 sm:$0xff]  ;;  %s4796_s28 = sld [smem:[#allocation20_spill]] }
 0x447   : > { %v2309_v43 = vadd.f32 %v2308_v8, %v2307_v35  ;;  %3967 = vrcp.f32 %v2295_v7  ;;  %v3771_v35 = vpack.c.bf16 %v2610_v4, %v2609_v2  ;;  %v2611_v7 = vld [vmem:[%s4791_s23 + $0x10] sm:$0xff]  ;;  %v2612_v8 = vld [vmem:[%s4791_s23 + $0x18] sm:$0xff] }
 0x448   : > { %3969 = vrcp.f32 %v2302_v9  ;;  %v3774_v9 = vpack.c.bf16 %v2612_v8, %v2611_v7 }
 0x449   : > { %3971 = vrcp.f32 %v2309_v43  ;;  %v3376_v43 = vld [vmem:[%s4793_s14] ss:$0 sm:$0xff]  ;;  %s4797_s14 = sld [smem:[#allocation24_spill]] }
 0x44a   : > { %v4593_v10 = vadd.f32 %v3376_v43, %v4556_v13  ;;  %v2775_v13 = vld [vmem:[%s4794_s12 + $0x8] sm:$0xff] }
 0x450   : > { %v3966_v12 = vpop.eup %3965 }
 0x451   : > { %v3968_v47 = vpop.eup %3967  ;;  %v2314_v15 = vmul.f32 %v3966_v12, %v3958_v42  ;;  %v2527_v12 = vld [vmem:[%s4790_s1 + $0x10] sm:$0xff] }
 0x452   : > { %v3970_v17 = vpop.eup %3969  ;;  %v2315_v18 = vmul.f32 %v3968_v47, %v3960_v45  ;;  %v2528_v47 = vld [vmem:[%s4790_s1 + $0x18] sm:$0xff]  ;;  %s4799_s1 = sld [smem:[#allocation21_spill]] }
 0x453   : > { %v3972_v19 = vpop.eup %3971  ;;  %v2316_v20 = vmul.f32 %v3970_v17, %v3962_v48  ;;  %v2318_v21 = vmul.f32 %v2314_v15, %v2053_v14  ;;  %v2774_v15 = vld [vmem:[%s4794_s12] sm:$0xff] }
 0x454   : > { %v2317_v22 = vmul.f32 %v3972_v19, %v3964_v51  ;;  %v2319_v23 = vmul.f32 %v2315_v18, %v2053_v14  ;;  %v3783_v17 = vpack.c.bf16 %v2775_v13, %v2774_v15  ;;  %v3386_v18 = vld [vmem:[%s4795_s11] ss:$0 sm:$0xff]  ;;  %s4798_s11 = sld [smem:[#allocation23_spill]] }
 0x455   : > { %v2320_v24 = vmul.f32 %v2316_v20, %v2053_v14  ;;  %v2322_v25 = vsel %vm1207_vm1, %v2318_v21, 0.0  ;;  %v2693_v19 = vld [vmem:[%s4796_s28] sm:$0xff]  ;;  %v2694_v20 = vld [vmem:[%s4796_s28 + $0x8] sm:$0xff] }
 0x456   : > { %v2321_v52 = vmul.f32 %v2317_v22, %v2053_v14  ;;  %v2323_v26 = vrot.slane %v2322_v25, 4  ;;  %v2329_v27 = vsel %vm1207_vm1, %v2319_v23, 0.0  ;;  %v3768_v14 = vpack.c.bf16 %v2528_v47, %v2527_v12 }
 0x457   : > { %v2330_v28 = vrot.slane %v2329_v27, 4  ;;  %v2336_v29 = vsel %vm1207_vm1, %v2320_v24, 0.0  ;;  %v3777_v24 = vpack.c.bf16 %v2694_v20, %v2693_v19 }
 0x458   : > { %v2324_v56 = vadd.f32 %v2323_v26, %v2322_v25  ;;  %v2337_v61 = vrot.slane %v2336_v29, 4  ;;  %v2343_v30 = vsel %vm1207_vm1, %v2321_v52, 0.0  ;;  %v2695_v52 = vld [vmem:[%s4796_s28 + $0x10] sm:$0xff]  ;;  %v2696_v26 = vld [vmem:[%s4796_s28 + $0x18] sm:$0xff] }
 0x459   : > { %v2331_v32 = vadd.f32 %v2330_v28, %v2329_v27  ;;  %v2344_v34 = vrot.slane %v2343_v30, 4  ;;  %v3780_v27 = vpack.c.bf16 %v2696_v26, %v2695_v52 }
 0x45a   : > { %v2325_v38 = vrot.slane %v2324_v56, 2  ;;  %v2338_v40 = vadd.f32 %v2337_v61, %v2336_v29  ;;  %v2777_v61 = vld [vmem:[%s4794_s12 + $0x18] sm:$0xff] }
 0x45b   : > { %v2332_v41 = vrot.slane %v2331_v32, 2  ;;  %v2345_v42 = vadd.f32 %v2344_v34, %v2343_v30 }
 0x45c   : > { %v2326_v45 = vadd.f32 %v2325_v38, %v2324_v56  ;;  %v2339_v46 = vrot.slane %v2338_v40, 2  ;;  %v2776_v56 = vld [vmem:[%s4794_s12 + $0x10] sm:$0xff] }
 0x45d   : > { %v2333_v48 = vadd.f32 %v2332_v41, %v2331_v32  ;;  %v2346_v49 = vrot.slane %v2345_v42, 2  ;;  %v3786_v30 = vpack.c.bf16 %v2777_v61, %v2776_v56  ;;  %v3388_v32 = vld [vmem:[%s4290_s20] ss:$0 sm:$0xff] }
 0x45e   : > { %v2327_v50 = vrot.slane %v2326_v45, 1  ;;  %v2340_v51 = vadd.f32 %v2339_v46, %v2338_v40  ;;  %v2988_v46 = vld [vmem:[%s4797_s14 + $0x8] sm:$0xff] }
 0x45f   : > { %v2334_v53 = vrot.slane %v2333_v48, 1  ;;  %v2347_v54 = vadd.f32 %v2346_v49, %v2345_v42 }
 0x460   : > { %v2328_v55 = vadd.f32 %v2327_v50, %v2326_v45  ;;  %v2341_v57 = vrot.slane %v2340_v51, 1  ;;  %v2987_v45 = vld [vmem:[%s4797_s14] sm:$0xff]  ;;  %v2990_v50 = vld [vmem:[%s4797_s14 + $0x18] sm:$0xff] }
 0x461   : > { %v2335_v58 = vadd.f32 %v2334_v53, %v2333_v48  ;;  %v2348_v59 = vrot.slane %v2347_v54, 1  ;;  %v2989_v48 = vld [vmem:[%s4797_s14 + $0x10] sm:$0xff]  ;;  %v3789_v49 = vpack.c.bf16 %v2988_v46, %v2987_v45  ;;  %v3394_v53 = vld [vmem:[%s4798_s11] ss:$0 sm:$0xff]  ;;  %s4801_s11 = sld [smem:[#allocation25_spill]] }
 0x462   : > { %v2342_v60 = vadd.f32 %v2341_v57, %v2340_v51  ;;  %v3792_v51 = vpack.c.bf16 %v2990_v50, %v2989_v48 }
 0x463   : > { %v2349_v62 = vadd.f32 %v2348_v59, %v2347_v54  ;;  %v2365_v63 = vsel %vm1720_vm2, %v2335_v58, %v2328_v55 }
 0x464   : > { %v2366_v36 = vsel %vm1722_vm3, %v2342_v60, %v2365_v63 }
 0x465   : > { %v2367_v0 = vsel %vm1724_vm4, %v2349_v62, %v2366_v36 }
 0x466   : > { %3603 = vmatmul.mubr.msk.f32.vlgmr.msra.gmra.mrb[10].mxu1 %vm1207_vm1, %v2367_v0 }
 0x467   : > { %3624 = vmatprep.mubr.msk.f32.mxu1 %vm4100_vm0, %v4101_v11  ;;  %3766 = vmatpush3.bf16.msra.mxu1 %v3765_v33 }
 0x468   : > { %3767 = vmatprep.subr.bf16.mxu1 %v4099_v3 }
 0x46b   : > { %3769 = vmatpush3.bf16.msra.mxu1 %v3768_v14 }
 0x46c   : > { %3776 = vmatprep.subr.bf16.mxu1 %v4099_v3 }
 0x539   : > { %v2436_v5 = vpop.f32.mrb[10].mxu1 }
 0x53a   : > { %v2437_v6 = vadd.f32 %v3384_v16, %v2436_v5  ;;  %v3604_v39 = vpop.f32.mrb[11].mxu1 }
 0x53c   : > { %3614 = vmatmul.mubr.msk.f32.vlgmr.msra.gmra.mrb[8].mxu0 %vm1207_vm1, %v2437_v6 }
 0x53d   : > { %3772 = vmatpush3.bf16.msra.mxu0 %v3771_v35  ;;  %3635 = vmatprep.mubr.msk.f32.mxu0 %vm4100_vm0, %v4101_v11 }
 0x53e   : > { %3773 = vmatprep.subr.bf16.mxu0 %v4099_v3 }
 0x541   : > { %3775 = vmatpush3.bf16.msra.mxu0 %v3774_v9 }
 0x542   : > { %3782 = vmatprep.subr.bf16.mxu0 %v4099_v3 }
 0x544   : > { %3636 = vmatmul.mubr.msk.f32.vlgmr.msra.gmra.mrb[10].mxu0 %vm1207_vm1, %v4593_v10 }
 0x545   : > { %3657 = vmatprep.mubr.msk.f32.mxu0 %vm4100_vm0, %v4101_v11  ;;  %3784 = vmatpush3.bf16.msra.mxu0 %v3783_v17 }
 0x546   : > { %3785 = vmatprep.subr.bf16.mxu0 %v4099_v3 }
 0x549   : > { %3787 = vmatpush3.bf16.msra.mxu0 %v3786_v30 }
 0x54a   : > { %3794 = vmatprep.subr.bf16.mxu0 %v4099_v3 }
 0x60f   : > { %v2520_v21 = vpop.f32.mrb[8].mxu0 }
 0x610   : > { %v2521_v22 = vadd.f32 %v3386_v18, %v2520_v21  ;;  %v3615_v23 = vpop.f32.mrb[9].mxu0 }
 0x612   : > { %v2524_v25 = vmax.f32 %v2521_v22, 0.0 }
 0x614   : > { %3625 = vmatmul.mubr.msk.f32.vlgmr.msra.gmra.mrb[12].mxu1 %vm1207_vm1, %v2524_v25 }
 0x615   : > { %3778 = vmatpush3.bf16.msra.mxu1 %v3777_v24  ;;  %3646 = vmatprep.mubr.msk.f32.mxu1 %vm4100_vm0, %v4101_v11 }
 0x616   : > { %3779 = vmatprep.subr.bf16.mxu1 %v4099_v3 }
 0x617   : > { %v4615_v28 = vpop.f32.mrb[10].mxu0 }
 0x618   : > { %v3637_v29 = vpop.f32.mrb[11].mxu0 }
 0x619   : > { %3781 = vmatpush3.bf16.msra.mxu1 %v3780_v27 }
 0x61a   : > { %3788 = vmatprep.subr.bf16.mxu1 %v4099_v3 }
 0x61c   : > { %3647 = vmatmul.mubr.msk.f32.vlgmr.msra.gmra.mrb[14].mxu1 %vm1207_vm1, %v4593_v10 }
 0x61d   : > { %3668 = vmatprep.mubr.msk.f32.mxu1 %vm4100_vm0, %v4101_v11  ;;  %3790 = vmatpush3.bf16.msra.mxu1 %v3789_v49 }
 0x61e   : > { %3791 = vmatprep.subr.bf16.mxu1 %v4099_v3 }
 0x621   : > { %3793 = vmatpush3.bf16.msra.mxu1 %v3792_v51 }
 0x6e7   : > { %v2605_v34 = vpop.f32.mrb[12].mxu1 }
 0x6e8   : > { %v4626_v38 = vadd.f32 %v3388_v32, %v2605_v34  ;;  %v3626_v40 = vpop.f32.mrb[13].mxu1 }
 0x6ea   : > { %3658 = vmatmul.mubr.msk.f32.vlgmr.msra.gmra.mrb[12].mxu0 %vm1207_vm1, %v4626_v38 }
 0x6eb   : > { %3695 = vmatprep.mubr.msk.f32.mxu0 %vm4100_vm0, %v4101_v11  ;;  %v3392_v11 = vld [vmem:[%s4799_s1] ss:$0 sm:$0xff]  ;;  %s4800_s1 = sld [smem:[#allocation19_spill]] }
 0x6ef   : > { %v2770_v41 = vpop.f32.mrb[14].mxu1 }
 0x6f0   : > { %v3648_v42 = vpop.f32.mrb[15].mxu1  ;;  %v2771_v62 = vadd.f32 %v3392_v11, %v2770_v41 }
 0x7bd   : > { %v2854_v54 = vpop.f32.mrb[12].mxu0 }
 0x7be   : > { %v2855_v55 = vadd.f32 %v3394_v53, %v2854_v54  ;;  %v3659_v57 = vpop.f32.mrb[13].mxu0  ;;  %v3390_v54 = vld [vmem:[%s4800_s1] ss:$0 sm:$0xff]  ;;  %s4104_s1 = smov 32  }
 0x7bf   : > { %v2690_v57 = vadd.f32 %v3390_v54, %v4615_v28  ;;  %v3099_v54 = vsel %vm3098_vm9, %v4626_v38, 0.0 }
 0x7c0   : > { %v2865_v58 = vrot.slane %v2855_v55, %v4411_v37 }
 0x7c2   : > { %v2866_v59 = vcombine.high %v2865_v58, %v2865_v58  ;;  %v2873_v60 = vrot.slane %v2865_v58, %v4411_v37 }
 0x7c4   : > { %v2880_v63 = vrot.slane %v2866_v59, %v4411_v37  ;;  %v2881_v36 = vcombine.high %v2873_v60, %v2873_v60  ;;  %v2886_v0 = vrot.slane %v2873_v60, %v4414_v44 }
 0x7c6   : > { %v2882_v31 = vcombine.high %v2880_v63, %v2880_v63  ;;  %v2890_v1 = vrot.slane %v2880_v63, %v4414_v44  ;;  %v2894_v33 = vrot.slane %v2881_v36, %v4414_v44  ;;  %v2903_v2 = vadd.f32 %v2886_v0, %v2771_v62 }
 0x7c8   : > { %v2898_v4 = vrot.slane %v2882_v31, %v4414_v44  ;;  %v2904_v16 = vadd.f32 %v2890_v1, %v2771_v62  ;;  %v2905_v5 = vadd.f32 %v2894_v33, %v2771_v62  ;;  %3973 = vtanh.f32 %v2903_v2 }
 0x7ca   : > { %v2906_v35 = vadd.f32 %v2898_v4, %v2771_v62  ;;  %3975 = vtanh.f32 %v2904_v16 }
 0x7cb   : > { %3977 = vtanh.f32 %v2905_v5 }
 0x7cc   : > { %3979 = vtanh.f32 %v2906_v35 }
 0x7d2   : > { %v3974_v6 = vpop.eup %3973 }
 0x7d3   : > { %v2911_v37 = vmul.f32 1.442695, %v3974_v6 }
 0x7d4   : > { %v3976_v39 = vpop.eup %3975 }
 0x7d5   : > { %v3978_v7 = vpop.eup %3977  ;;  %3981 = vpow2.f32 %v2911_v37  ;;  %v2913_v8 = vmul.f32 1.442695, %v3976_v39 }
 0x7d6   : > { %v3980_v9 = vpop.eup %3979  ;;  %v2915_v43 = vmul.f32 1.442695, %v3978_v7 }
 0x7d7   : > { %3983 = vpow2.f32 %v2913_v8  ;;  %v2917_v12 = vmul.f32 1.442695, %v3980_v9 }
 0x7d8   : > { %3985 = vpow2.f32 %v2915_v43 }
 0x7d9   : > { %3987 = vpow2.f32 %v2917_v12 }
 0x7df   : > { %v3982_v47 = vpop.eup %3981 }
 0x7e0   : > { %v2919_v14 = vsel %vm1207_vm1, %v3982_v47, 0.0 }
 0x7e1   : > { %v3984_v15 = vpop.eup %3983  ;;  %v2920_v13 = vrot.slane %v2919_v14, 4 }
 0x7e2   : > { %v3986_v17 = vpop.eup %3985  ;;  %v2926_v18 = vsel %vm1207_vm1, %v3984_v15, 0.0 }
 0x7e3   : > { %v3988_v19 = vpop.eup %3987  ;;  %v2921_v20 = vadd.f32 %v2920_v13, %v2919_v14  ;;  %v2927_v21 = vrot.slane %v2926_v18, 4  ;;  %v2933_v22 = vsel %vm1207_vm1, %v3986_v17, 0.0 }
 0x7e4   : > { %v2934_v23 = vrot.slane %v2933_v22, 4  ;;  %v2940_v24 = vsel %vm1207_vm1, %v3988_v19, 0.0 }
 0x7e5   : > { %v2922_v25 = vrot.slane %v2921_v20, 2  ;;  %v2928_v52 = vadd.f32 %v2927_v21, %v2926_v18  ;;  %v2941_v26 = vrot.slane %v2940_v24, 4 }
 0x7e6   : > { %v2935_v27 = vadd.f32 %v2934_v23, %v2933_v22 }
 0x7e7   : > { %v2923_v29 = vadd.f32 %v2922_v25, %v2921_v20  ;;  %v2929_v56 = vrot.slane %v2928_v52, 2  ;;  %v2942_v61 = vadd.f32 %v2941_v26, %v2940_v24 }
 0x7e8   : > { %v2936_v30 = vrot.slane %v2935_v27, 2 }
 0x7e9   : > { %v2924_v32 = vrot.slane %v2923_v29, 1  ;;  %v2930_v34 = vadd.f32 %v2929_v56, %v2928_v52  ;;  %v2943_v40 = vrot.slane %v2942_v61, 2  ;;  %v3135_v56 = vld [vmem:[%s4295_s13] sm:$0xff] }
 0x7ea   : > { %v2937_v41 = vadd.f32 %v2936_v30, %v2935_v27  ;;  %v3137_v30 = vld [vmem:[%s4295_s13 + $0x10] sm:$0xff] }
 0x7eb   : > { %v2925_v42 = vadd.f32 %v2924_v32, %v2923_v29  ;;  %v2931_v45 = vrot.slane %v2930_v34, 1  ;;  %v2944_v46 = vadd.f32 %v2943_v40, %v2942_v61  ;;  %v3136_v61 = vld [vmem:[%s4295_s13 + $0x8] sm:$0xff] }
 0x7ec   : > { %v2938_v48 = vrot.slane %v2937_v41, 1  ;;  %v3795_v32 = vpack.c.bf16 %v3136_v61, %v3135_v56 }
 0x7ed   : > { %v2932_v49 = vadd.f32 %v2931_v45, %v2930_v34  ;;  %v2945_v50 = vrot.slane %v2944_v46, 1  ;;  %3989 = vrcp.f32 %v2925_v42  ;;  %v3138_v34 = vld [vmem:[%s4295_s13 + $0x18] sm:$0xff]  ;;  %v3140_v42 = vld [vmem:[%s4295_s13 + $0x28] sm:$0xff] }
 0x7ee   : > { %v2939_v51 = vadd.f32 %v2938_v48, %v2937_v41  ;;  %3796 = vmatpush3.bf16.msra.mxu0 %v3795_v32  ;;  %v3798_v40 = vpack.c.bf16 %v3138_v34, %v3137_v30  ;;  %v3139_v41 = vld [vmem:[%s4295_s13 + $0x20] sm:$0xff]  ;;  %v3142_v48 = vld [vmem:[%s4295_s13 + $0x38] sm:$0xff] }
 0x7ef   : > { %3991 = vrcp.f32 %v2932_v49  ;;  %v2946_v53 = vadd.f32 %v2945_v50, %v2944_v46  ;;  %3797 = vmatprep.subr.bf16.mxu0 %v4099_v3  ;;  %v3801_v45 = vpack.c.bf16 %v3140_v42, %v3139_v41  ;;  %v3141_v46 = vld [vmem:[%s4295_s13 + $0x30] sm:$0xff]  ;;  %v3143_v50 = vld [vmem:[%s4295_s13 + $0x40] sm:$0xff] }
 0x7f0   : > { %3993 = vrcp.f32 %v2939_v51  ;;  %v3804_v49 = vpack.c.bf16 %v3142_v48, %v3141_v46  ;;  %v3144_v51 = vld [vmem:[%s4295_s13 + $0x48] sm:$0xff] }
 0x7f1   : > { %3995 = vrcp.f32 %v2946_v53  ;;  %v3807_v53 = vpack.c.bf16 %v3144_v51, %v3143_v50 }
 0x7f2   : > { %3799 = vmatpush3.bf16.msra.mxu0 %v3798_v40 }
 0x7f3   : > { %3800 = vmatprep.subr.bf16.mxu0 %v4099_v3 }
 0x7f6   : > { %3802 = vmatpush3.bf16.msra.mxu0 %v3801_v45 }
 0x7f7   : > { %v3990_v55 = vpop.eup %3989  ;;  %3803 = vmatprep.subr.bf16.mxu0 %v4099_v3 }
 0x7f8   : > { %v2951_v58 = vmul.f32 %v3990_v55, %v3982_v47  ;;  %v3100_v55 = vrot.slane %v3099_v54, 4 }
 0x7f9   : > { %v3992_v11 = vpop.eup %3991 }
 0x7fa   : > { %v3994_v59 = vpop.eup %3993  ;;  %v2952_v60 = vmul.f32 %v3992_v11, %v3984_v15  ;;  %v2955_v62 = vmul.f32 %v2951_v58, %v2690_v57  ;;  %3805 = vmatpush3.bf16.msra.mxu0 %v3804_v49  ;;  %v3101_v58 = vadd.f32 %v3100_v55, %v3099_v54 }
 0x7fb   : > { %v3996_v63 = vpop.eup %3995  ;;  %v2953_v36 = vmul.f32 %v3994_v59, %v3986_v17  ;;  %3806 = vmatprep.subr.bf16.mxu0 %v4099_v3 }
 0x7fc   : > { %v2954_v0 = vmul.f32 %v3996_v63, %v3988_v19  ;;  %v2956_v31 = vmul.f32 %v2952_v60, %v2690_v57  ;;  %v2959_v1 = vsel %vm1207_vm1, %v2955_v62, 0.0  ;;  %v3102_v63 = vrot.slane %v3101_v58, 2 }
 0x7fd   : > { %v2957_v33 = vmul.f32 %v2953_v36, %v2690_v57  ;;  %v2960_v2 = vrot.slane %v2959_v1, 4 }
 0x7fe   : > { %v2958_v4 = vmul.f32 %v2954_v0, %v2690_v57  ;;  %v2966_v16 = vsel %vm1207_vm1, %v2956_v31, 0.0  ;;  %3808 = vmatpush3.bf16.msra.mxu0 %v3807_v53  ;;  %v3396_v57 = vld [vmem:[%s4801_s11] ss:$0 sm:$0xff]  ;;  %v3145_v0 = vld [vmem:[%s4295_s13 + $0x50] sm:$0xff]  ;;  %v3146_v31 = vld [vmem:[%s4295_s13 + $0x58] sm:$0xff]  ;;  %s4105_s11 = smov 64  }
 0x7ff   : > { %v2961_v5 = vadd.f32 %v2960_v2, %v2959_v1  ;;  %v2967_v35 = vrot.slane %v2966_v16, 4  ;;  %v2973_v28 = vsel %vm1207_vm1, %v2957_v33, 0.0  ;;  %3809 = vmatprep.subr.bf16.mxu0 %v4099_v3  ;;  %v3810_v33 = vpack.c.bf16 %v3146_v31, %v3145_v0  ;;  %v3091_v3 = vpop.permute.xlu0 %3090 }
 0x800   : > { %v2974_v6 = vrot.slane %v2973_v28, 4  ;;  %v2980_v37 = vsel %vm1207_vm1, %v2958_v4, 0.0  ;;  %v3103_v2 = vadd.f32 %v3102_v63, %v3101_v58 }
 0x801   : > { %v2962_v39 = vrot.slane %v2961_v5, 2  ;;  %v2968_v7 = vadd.f32 %v2967_v35, %v2966_v16  ;;  %v2981_v8 = vrot.slane %v2980_v37, 4 }
 0x802   : > { %v2975_v9 = vadd.f32 %v2974_v6, %v2973_v28  ;;  %3811 = vmatpush3.bf16.msra.mxu0 %v3810_v33  ;;  %v3096_v28 = vrot.slane %v3091_v3, %v4414_v44 }
 0x803   : > { %v2963_v43 = vadd.f32 %v2962_v39, %v2961_v5  ;;  %v2969_v12 = vrot.slane %v2968_v7, 2  ;;  %v2982_v47 = vadd.f32 %v2981_v8, %v2980_v37  ;;  %v3104_v5 = vrot.slane %v3103_v2, 1  ;;  %v3109_v35 = vpop.permute.xlu0 %3108 }
 0x804   : > { %v2976_v14 = vrot.slane %v2975_v9, 2  ;;  %v3114_v39 = vrot.slane %v3109_v35, %v4414_v44 }
 0x805   : > { %v2964_v15 = vrot.slane %v2963_v43, 1  ;;  %v2970_v13 = vadd.f32 %v2969_v12, %v2968_v7  ;;  %v2983_v17 = vrot.slane %v2982_v47, 2  ;;  %v3105_v37 = vadd.f32 %v3104_v5, %v3103_v2 }
 0x806   : > { %v2977_v18 = vadd.f32 %v2976_v14, %v2975_v9  ;;  %v3081_v9 = vsel %vm1207_vm1, %v4593_v10, 0.0  ;;  %v3147_v10 = vld [vmem:[%s4802_s4] sm:$0x1] }
 0x807   : > { %v2971_v19 = vrot.slane %v2970_v13, 1  ;;  %v2984_v20 = vadd.f32 %v2983_v17, %v2982_v47  ;;  %v2965_v22 = vadd.f32 %v2964_v15, %v2963_v43  ;;  %v3115_v8 = vmul.f32 %v3114_v39, %v3105_v37 }
 0x808   : > { %v2978_v21 = vrot.slane %v2977_v18, 1  ;;  %v3082_v43 = vrot.slane %v3081_v9, 4 }
 0x809   : > { %v2972_v23 = vadd.f32 %v2971_v19, %v2970_v13  ;;  %v2985_v24 = vrot.slane %v2984_v20, 1 }
 0x80a   : > { %v2979_v25 = vadd.f32 %v2978_v21, %v2977_v18  ;;  %v3083_v12 = vadd.f32 %v3082_v43, %v3081_v9 }
 0x80b   : > { %v2986_v52 = vadd.f32 %v2985_v24, %v2984_v20  ;;  %v3002_v26 = vsel %vm1720_vm2, %v2972_v23, %v2965_v22 }
 0x80c   : > { %v3003_v27 = vsel %vm1722_vm3, %v2979_v25, %v3002_v26  ;;  %v3084_v47 = vrot.slane %v3083_v12, 2 }
 0x80d   : > { %v3004_v29 = vsel %vm1724_vm4, %v2986_v52, %v3003_v27 }
 0x80e   : > { %3669 = vmatmul.mubr.msk.f32.vlgmr.msra.gmra.mrb[16].mxu1 %vm1207_vm1, %v3004_v29  ;;  %v3085_v14 = vadd.f32 %v3084_v47, %v3083_v12 }
 0x810   : > { %v3086_v15 = vrot.slane %v3085_v14, 1 }
 0x812   : > { %v3087_v13 = vadd.f32 %v3086_v15, %v3085_v14 }
 0x814   : > { %v3097_v44 = vmul.f32 %v3096_v28, %v3087_v13 }
 0x8e1   : > { %v3073_v11 = vpop.f32.mrb[16].mxu1 }
 0x8e2   : > { %v3074_v59 = vadd.f32 %v3396_v57, %v3073_v11  ;;  %v3670_v60 = vpop.f32.mrb[17].mxu1 }
 0x8e4   : > { %v3116_v62 = vsel %vm3098_vm9, %v3074_v59, 0.0 }
 0x8e5   : > { %v3117_v36 = vrot.slane %v3116_v62, 4 }
 0x8e7   : > { %v3118_v1 = vadd.f32 %v3117_v36, %v3116_v62 }
 0x8e9   : > { %v3119_v4 = vrot.slane %v3118_v1, 2 }
 0x8eb   : > { %v3120_v16 = vadd.f32 %v3119_v4, %v3118_v1 }
 0x8ed   : > { %v3121_v38 = vrot.slane %v3120_v16, 1 }
 0x8ef   : > { %v3122_v6 = vadd.f32 %v3121_v38, %v3120_v16 }
 0x8f1   : > { %v3123_v7 = vmul.f32 %v3122_v6, %v3096_v28 }
 0x8f3   : > { %3125 = vrot.lane.b32.xlu1 %v3123_v7, %s4104_s1  ;;  %s1178_s1 = sand.u32 1, %s4051_s16  }
 0x8f4   : > { %s1179_s3 = scalar_lea.vmem [#allocation2], %s1178_s1  ;;  %s3225_s8 = scalar_lea.sflag [#allocation3], %s1178_s1 }
 0x8f5   : > { %s3237_s5 = sshll.u32 %s1179_s3, 4  ;;  %s4690_s5 = int_to_ptr.vmem [resolvable:$true] %s3237_s5 }
 0x8f6   : > { %s3997_s9 = scalar_lea.vmem %s4690_s5, 16 }
 0x8f7   : > { %3129 = vrot.lane.b32.xlu1 %v3115_v8, %s4105_s11  ;;  %s3399_s11 = sshll.u32 %s4328_s0, 4  ;;  %p3998_p11 = scmp.ne.s32.totalorder %s4690_s5, %s3997_s9 }
 0x8f8   : > { %s4688_s6 = scalar_lea.hbm %s4305_s17, %s3399_s11  ;;  %s4106_s0 = smov [#allocation2]  }
 0x8f9   : > { %p3999_p12 = pnand %p3998_p11, %p4345_p5  ;;  %s4001_s4 = sshll.u32 %s4106_s0, 4  ;;  %s4002_s4 = int_to_ptr.vmem [resolvable:$false] %s4001_s4 }
 0x8fa   : > { %s4003_s12 = scalar_lea.vmem %s4002_s4, 32  ;;  %p4004_p0 = scmp.lt.s32.totalorder %s4690_s5, %s4002_s4 }
 0x8fb   : > { %p4000_p13 = pneg %p3999_p12  ;;  %p4005_p1 = scmp.lt.s32.totalorder %s4003_s12, %s3997_s9 }
 0x8fd   : > { %p4006_p2 = por %p4005_p1, %p4004_p0 }
 0x8ff   : > { %p4007_p3 = pnand %p4006_p2, %p4000_p13 }
 0x965   : > { %v3126_v17 = vpop.permute.xlu1 %3125 }
 0x966   : > { %v3132_v18 = vsel %vm1207_vm1, %v3097_v44, %v3126_v17 }
 0x969   : > { %v3130_v19 = vpop.permute.xlu1 %3129 }
 0x96a   : > { %v3134_v20 = vsel %vm3133_vm10, %v3132_v18, %v3130_v19 }
 0x96b   : > { %3696 = vmatmul.mubr.msk.f32.vlgmr.msra.gmra.mrb[14].mxu0 %vm3148_vm11, %v3134_v20 }
 0xa3e   : > { %v3218_v21 = vpop.f32.mrb[14].mxu0 }
 0xa3f   : > { %v3219_v22 = vadd.f32 %v3218_v21, %v3147_v10  ;;  %v3697_v23 = vpop.f32.mrb[15].mxu0 }
 0xa41   : > { %3223 = vst.msk [vmem:[%s1179_s3] sm:$0x1] %vm3222_vm12, %v3219_v22 }
 0xa42   : > { %4010 = shalt.err (!%p4007_p3)
}
 0xa43   : > { %s4011_s3 = scalar_lea.hbm %s4688_s6, 16  ;;  %s4015_s1 = scalar_lea.hbm %s4305_s17, 32 }
 0xa44   : > { %p4012_p4 = scmp.ne.s32.totalorder %s4688_s6, %s4011_s3  ;;  %p4016_p9 = scmp.lt.u32.totalorder %s4688_s6, %s4305_s17 }
 0xa45   : > { %p4017_p10 = scmp.lt.u32.totalorder %s4015_s1, %s4011_s3  ;;  %p4019_p12 = scmp.lt.u32.totalorder %s4011_s3, %s4688_s6 }
 0xa46   : > { %p4013_p7 = pnand %p4012_p4, %p4345_p5 }
 0xa47   : > { %p4018_p11 = por %p4017_p10, %p4016_p9 }
 0xa48   : > { %p4014_p8 = pneg %p4013_p7 }
 0xa49   : > { %p4020_p0 = por %p4019_p12, %p4018_p11 }
 0xa4b   : > { %p4021_p13 = pnand %p4020_p0, %p4014_p8 }
 0xa4d   : > { %4024 = shalt.err (!%p4021_p13)
}
 0xa4e   : > { %3812 = dma.vmem_to_hbm [thread:$0]  (%p4345_p5), %s4690_s5, 16, %s4688_s6, %s3225_s8  }
 0xa4f PF: > { %p3818_p1 = scmp.ge.s32.totalorder %s4059_s22, 2  ;;  %s3249_s9 = sand.u32 1, %s4047_s15  }
 0xa50   : > { %s3250_s4 = scalar_lea.sflag [#allocation3], %s3249_s9 }
 0xa51   : > { %p3815_p2 = pnand %p3818_p1, %p4349_p6 }
 0xa53   : > { %4042 = dma.done.wait (!%p3815_p2), %s3250_s4, 16  }
 0xa54   : > { %4044 = vsyncadd (!%p3815_p2), %s3250_s4, 4294967280  ;;  %p87_p3 = scmp.ge.s32.totalorder %s4332_s26, 4   ;;  %s4803_s15 = smov %s4051_s16 }
 0xa55   : > { %s4804_s16 = smov %s4055_s18  ;;  %s4805_s18 = smov %s4343_s2 }
 0xa56   : > { %s4806_s22 = smov %s4332_s26  ;;  %89 = sbr.rel (!%p87_p3) target bundleno = 78 (0x4e), region = 254 }
 0xa5d   :  { %3254 = vsyncpa [#allocation3], 1 }
 0xa5e   :  { %3256 = vsyncpa [#allocation3 + $0x1], 1 }

</bundles_post_ra>
